<compile_context>
chip_gen: v6e
topology: v6e:2x2x1
jax: 0.10.0
libtpu: 0.0.40
codegen_flags: <defaults>
</compile_context>

<pallas_src>
import functools
import math

import jax
import jax.numpy as jnp
from jax.experimental import pallas as pl
from jax.experimental.pallas import tpu as pltpu


# ---------------------------------------------------------------------------
# Kernel
# ---------------------------------------------------------------------------
def _encoder_stack_kernel(x_hbm,
                          a_attn_ref, g_attn_ref,
                          wqkv_ref, bqkv_ref, wo_ref, bo_ref,
                          a_ffn_ref, g_ffn_ref,
                          w1_ref, b1_ref, w2_ref, b2_ref,
                          o_ref,
                          act_ref, attn_ref,
                          *, nhead, batch_tile, seq_len):
    """Grid step (bt, l): apply encoder layer l to batch tile bt.

    The running activation for the batch tile lives in `act_ref` (VMEM, f32,
    shape (Bt*S, D)) across the inner layer axis; the HBM output block is written
    once at the last layer.
    """
    layer = pl.program_id(1)
    n_layers = pl.num_programs(1)
    bt_idx = pl.program_id(0)

    Bt, S = batch_tile, seq_len
    rows = Bt * S

    @pl.when(layer == 0)
    def _():
        # Load this batch tile's activations straight into the resident scratch
        # (x is consumed exactly once per tile; no double-buffered input block).
        start = pl.multiple_of(bt_idx * rows, rows)
        pltpu.sync_copy(x_hbm.at[pl.ds(start, rows)], act_ref)

    x = act_ref[...]                                     # (Bt*S, D) float32
    D = x.shape[-1]
    dh = D // nhead
    bf16 = jnp.bfloat16

    # ---- DyT pre-attention: gamma * tanh(alpha * x)  (beta folded into bqkv) ----
    src2 = (g_attn_ref[0] * jnp.tanh(a_attn_ref[0] * x)).astype(bf16)

    # ---- Fused QKV projection on the full (Bt*S, 3D) slab ----
    # 1/sqrt(dh) attention scale is pre-folded into the q columns of wqkv / bqkv.
    qkv = jnp.dot(src2, wqkv_ref[0],
                  preferred_element_type=jnp.float32) + bqkv_ref[0]      # (Bt*S, 3D)

    # ---- Per-(batch element, head) self-attention ----
    # Head outputs are written lane-dense into attn_ref at static offsets so the
    # out-projection runs as a single (Bt*S, D) x (D, D) matmul and no per-head
    # partials stay live across the loop.
    for b in range(Bt):                                  # static unroll (small Bt)
        r0 = b * S
        for h in range(nhead):                           # static unroll over heads
            q = qkv[r0:r0 + S, h * dh:(h + 1) * dh].astype(bf16)          # (S, dh)
            k = qkv[r0:r0 + S, D + h * dh:D + (h + 1) * dh].astype(bf16)  # (S, dh)
            v = qkv[r0:r0 + S, 2 * D + h * dh:2 * D + (h + 1) * dh].astype(bf16)
            s = jax.lax.dot_general(q, k, (((1,), (1,)), ((), ())),
                                    preferred_element_type=jnp.float32)   # (S, S)
            s = s - jnp.max(s, axis=-1, keepdims=True)
            p = jnp.exp(s)
            inv_l = pl.reciprocal(jnp.sum(p, axis=-1, keepdims=True), approx=True)
            head = jnp.dot(p.astype(bf16), v,
                           preferred_element_type=jnp.float32)            # (S, dh)
            # Normalize the small (S, dh) output, not the (S, S) probabilities.
            attn_ref[r0:r0 + S, h * dh:(h + 1) * dh] = head * inv_l

    attn_out = jnp.dot(attn_ref[...].astype(bf16), wo_ref[0],
                       preferred_element_type=jnp.float32) + bo_ref[0]    # (Bt*S, D)

    src = x + attn_out                                   # residual (dropout1 = id)

    # ---- DyT pre-FFN (beta folded into b1) + FFN: Linear -> ReLU -> Linear ----
    src2f = (g_ffn_ref[0] * jnp.tanh(a_ffn_ref[0] * src)).astype(bf16)
    hidden = jnp.maximum(
        jnp.dot(src2f, w1_ref[0], preferred_element_type=jnp.float32) + b1_ref[0],
        0.0)
    ffn_out = jnp.dot(hidden.astype(bf16), w2_ref[0],
                      preferred_element_type=jnp.float32) + b2_ref[0]

    out = src + ffn_out                                  # residual (dropout2 = id)
    act_ref[...] = out

    @pl.when(layer == n_layers - 1)
    def _():
        o_ref[...] = out.astype(o_ref.dtype)


# ---------------------------------------------------------------------------
# Wrapper
# ---------------------------------------------------------------------------
def _default_batch_tile(B, max_tile=8):
    """Largest divisor of B that is <= max_tile, preferring to keep >= 2 batch
    blocks so the leading 'parallel' grid axis can be megacore-sharded (v7x)."""
    divisors = [d for d in range(1, B + 1) if B % d == 0 and d <= max_tile]
    multi = [d for d in divisors if B // d >= 2]
    return max(multi) if multi else max(divisors)


def _vmem_limit_bytes():
    """Scoped VMEM budget derived from the chip (128 MiB v5e/v6e, 64 MiB v7x)."""
    try:
        cap = pltpu.get_tpu_info().vmem_capacity_bytes
        return int(cap * 3 // 4)
    except Exception:
        return 64 * 1024 * 1024


def encoder_forward(x, kernel_params, nhead, *, batch_tile=None):
    """CustomTransformerEncoder forward.  x: (B, S, D) float32."""
    B, S, D = x.shape
    assert D % nhead == 0, "d_model must be divisible by nhead"
    num_layers = kernel_params['wqkv'].shape[0]
    F = kernel_params['w1'].shape[-1]

    Bt = _default_batch_tile(B) if batch_tile is None else batch_tile
    assert B % Bt == 0, "batch must be divisible by batch_tile"

    # Flatten batch*seq on the host (free metadata reshape) so the kernel works on
    # lane/sublane-dense 2-D slabs throughout.
    x2 = x.reshape(B * S, D)

    names = ('a_attn', 'g_attn', 'wqkv', 'bqkv', 'wo', 'bo',
             'a_ffn', 'g_ffn', 'w1', 'b1', 'w2', 'b2')
    weights = [kernel_params[n] for n in names]

    w_map = lambda b, l: (l, 0, 0)            # weights: streamed along layer axis
    o_map = lambda b, l: (b, 0)               # output block: constant across layers

    in_specs = [pl.BlockSpec(memory_space=pl.ANY)]   # x stays in HBM; manual DMA @ layer 0
    in_specs += [pl.BlockSpec((1,) + w.shape[1:], w_map) for w in weights]

    kernel = functools.partial(_encoder_stack_kernel,
                               nhead=nhead, batch_tile=Bt, seq_len=S)

    # Advisory cost hint for XLA's scheduler around the fused custom call.
    per_elem_layer_flops = 8 * S * D * D + 4 * S * S * D + 4 * S * D * F
    weight_bytes_per_layer = 2 * (4 * D * D + 2 * D * F)          # bf16 matrices
    cost = pl.CostEstimate(
        flops=int(B * num_layers * per_elem_layer_flops),
        transcendentals=int(B * num_layers * (2 * S * D + nhead * S * S)),
        bytes_accessed=int(num_layers * (B // Bt) * weight_bytes_per_layer
                           + 2 * B * S * D * 4),
    )

    out2 = pl.pallas_call(
        kernel,
        out_shape=jax.ShapeDtypeStruct((B * S, D), x.dtype),
        grid_spec=pltpu.PrefetchScalarGridSpec(
            num_scalar_prefetch=0,
            grid=(B // Bt, num_layers),
            in_specs=in_specs,
            out_specs=pl.BlockSpec((Bt * S, D), o_map),
            scratch_shapes=[pltpu.VMEM((Bt * S, D), jnp.float32),   # resident activation
                            pltpu.VMEM((Bt * S, D), jnp.float32)],  # attention head slab
        ),
        compiler_params=pltpu.CompilerParams(
            dimension_semantics=("parallel", "arbitrary"),
            vmem_limit_bytes=_vmem_limit_bytes(),
        ),
        cost_estimate=cost,
    )(x2, *weights)
    return out2.reshape(B, S, D)


# ---------------------------------------------------------------------------
# Host-side parameter preparation (PyTorch layout -> kernel layout)
# ---------------------------------------------------------------------------
def prepare_kernel_params(torch_layers, nhead):
    """Transpose weights for direct (x @ W) MXU use, fold the DyT betas into the
    following matmul biases, fold the 1/sqrt(dh) attention scale into the q columns
    of the in-projection, cast matrices to bf16, and stack all layers on a leading
    num_layers axis.  Pure one-time host-side layout plumbing."""
    f32, bf16 = jnp.float32, jnp.bfloat16
    per_layer = []
    for p in torch_layers:
        D = p['out_proj_weight'].shape[0]
        dh = D // nhead
        q_scale = 1.0 / math.sqrt(dh)

        wqkv_t = p['in_proj_weight'].T                              # (D, 3D)
        bqkv_eff = p['in_proj_bias'] + p['dyt_attn_beta'] @ wqkv_t  # (3D,)
        col_scale = jnp.concatenate(
            [jnp.full((D,), q_scale, f32), jnp.ones((2 * D,), f32)])
        wqkv_scaled = wqkv_t * col_scale[None, :]
        bqkv_scaled = bqkv_eff * col_scale

        w1_t = p['w1'].T                                            # (D, F)
        b1_eff = p['b1'] + p['dyt_ffn_beta'] @ w1_t

        per_layer.append({
            'a_attn': p['dyt_attn_alpha'].reshape(1, -1).astype(f32),
            'g_attn': p['dyt_attn_gamma'].reshape(1, -1).astype(f32),
            'wqkv': wqkv_scaled.astype(bf16),                       # (D, 3D)
            'bqkv': bqkv_scaled.reshape(1, -1).astype(f32),
            'wo': p['out_proj_weight'].T.astype(bf16),              # (D, D)
            'bo': p['out_proj_bias'].reshape(1, -1).astype(f32),
            'a_ffn': p['dyt_ffn_alpha'].reshape(1, -1).astype(f32),
            'g_ffn': p['dyt_ffn_gamma'].reshape(1, -1).astype(f32),
            'w1': w1_t.astype(bf16),                                # (D, F)
            'b1': b1_eff.reshape(1, -1).astype(f32),
            'w2': p['w2'].T.astype(bf16),                           # (F, D)
            'b2': p['b2'].reshape(1, -1).astype(f32),
        })
    return {k: jnp.stack([lp[k] for lp in per_layer], axis=0)
            for k in per_layer[0]}


def init_torch_layout_layer(key, d_model, dim_feedforward, init_alpha=0.01):
    """Random params in the PyTorch module's native layout (nn.Linear = x @ W.T + b).
    DyT betas get small random values (PyTorch init is zeros) so the beta-folding
    path is actually exercised by the numerical check."""
    ks = jax.random.split(key, 10)
    f32 = jnp.float32
    p = {}
    p['dyt_attn_alpha'] = jnp.full((d_model,), init_alpha, f32)
    p['dyt_attn_gamma'] = jnp.ones((d_model,), f32)
    p['dyt_attn_beta'] = jax.random.normal(ks[8], (d_model,), f32) * 0.01
    p['in_proj_weight'] = jax.random.normal(ks[0], (3 * d_model, d_model), f32) * 0.05
    p['in_proj_bias'] = jax.random.normal(ks[1], (3 * d_model,), f32) * 0.01
    p['out_proj_weight'] = jax.random.normal(ks[2], (d_model, d_model), f32) * 0.05
    p['out_proj_bias'] = jax.random.normal(ks[3], (d_model,), f32) * 0.01
    p['dyt_ffn_alpha'] = jnp.full((d_model,), init_alpha, f32)
    p['dyt_ffn_gamma'] = jnp.ones((d_model,), f32)
    p['dyt_ffn_beta'] = jax.random.normal(ks[9], (d_model,), f32) * 0.01
    p['w1'] = jax.random.normal(ks[4], (dim_feedforward, d_model), f32) * 0.05
    p['b1'] = jax.random.normal(ks[5], (dim_feedforward,), f32) * 0.01
    p['w2'] = jax.random.normal(ks[6], (d_model, dim_feedforward), f32) * 0.05
    p['b2'] = jax.random.normal(ks[7], (d_model,), f32) * 0.01
    return p


# ---------------------------------------------------------------------------
# Pure-JAX f32 reference (mirrors the PyTorch forward)
# ---------------------------------------------------------------------------
def _reference_layer(x, p, nhead):
    B, S, D = x.shape
    dh = D // nhead

    def dyt(v, a, g, b):
        return g * jnp.tanh(a * v) + b

    src2 = dyt(x, p['dyt_attn_alpha'], p['dyt_attn_gamma'], p['dyt_attn_beta'])
    qkv = src2 @ p['in_proj_weight'].T + p['in_proj_bias']          # (B, S, 3D)
    q, k, v = qkv[..., :D], qkv[..., D:2 * D], qkv[..., 2 * D:]
    qh = q.reshape(B, S, nhead, dh)
    kh = k.reshape(B, S, nhead, dh)
    vh = v.reshape(B, S, nhead, dh)
    s = jnp.einsum('bqhd,bkhd->bhqk', qh, kh) / jnp.sqrt(jnp.float32(dh))
    pa = jax.nn.softmax(s, axis=-1)
    attn = jnp.einsum('bhqk,bkhd->bqhd', pa, vh).reshape(B, S, D)
    attn = attn @ p['out_proj_weight'].T + p['out_proj_bias']
    src = x + attn
    src2 = dyt(src, p['dyt_ffn_alpha'], p['dyt_ffn_gamma'], p['dyt_ffn_beta'])
    h = jnp.maximum(src2 @ p['w1'].T + p['b1'], 0.0)
    return src + (h @ p['w2'].T + p['b2'])


def reference_forward(x, torch_layers, nhead):
    out = x
    for p in torch_layers:
        out = _reference_layer(out, p, nhead)
    return out


if __name__ == "__main__":
    # Small shapes consistent with the module's forward: (batch, seq, d_model).
    # B=4 with the default batch tile (Bt=2) exercises both the batch-block axis
    # and the carried-activation layer axis.
    B, S, D = 4, 8, 32
    nhead = 4
    dim_feedforward = 64
    num_layers = 2

    root = jax.random.PRNGKey(0)
    kx, kp = jax.random.split(root)
    x = jax.random.normal(kx, (B, S, D), jnp.float32)

    layer_keys = jax.random.split(kp, num_layers)
    torch_layers = [init_torch_layout_layer(k, D, dim_feedforward) for k in layer_keys]
    kernel_params = prepare_kernel_params(torch_layers, nhead)

    out = encoder_forward(x, kernel_params, nhead)
    out = jax.block_until_ready(out)
    assert out.shape == (B, S, D)

    # Sanity check vs the pure-JAX f32 reference (bf16 MXU operands + approx
    # reciprocal in softmax -> loose tolerance).
    ref = reference_forward(x, torch_layers, nhead)
    err = float(jnp.max(jnp.abs(out - ref)))
    assert err < 5e-2, f"max abs error {err} too large"

    print("KERNEL_OK")
</pallas_src>

<mosaic_0001>
module attributes {stable_mosaic.version = 11 : i64} {
  func.func @_encoder_stack_kernel(%arg0: i32, %arg1: i32, %arg2: memref<32x32xf32, #tpu.memory_space<any>>, %arg3: memref<1x1x32xf32, #tpu.memory_space<vmem>>, %arg4: memref<1x1x32xf32, #tpu.memory_space<vmem>>, %arg5: memref<1x32x96xbf16, #tpu.memory_space<vmem>>, %arg6: memref<1x1x96xf32, #tpu.memory_space<vmem>>, %arg7: memref<1x32x32xbf16, #tpu.memory_space<vmem>>, %arg8: memref<1x1x32xf32, #tpu.memory_space<vmem>>, %arg9: memref<1x1x32xf32, #tpu.memory_space<vmem>>, %arg10: memref<1x1x32xf32, #tpu.memory_space<vmem>>, %arg11: memref<1x32x64xbf16, #tpu.memory_space<vmem>>, %arg12: memref<1x1x64xf32, #tpu.memory_space<vmem>>, %arg13: memref<1x64x32xbf16, #tpu.memory_space<vmem>>, %arg14: memref<1x1x32xf32, #tpu.memory_space<vmem>>, %arg15: memref<16x32xf32, #tpu.memory_space<vmem>>, %arg16: memref<16x32xf32, #tpu.memory_space<vmem>>, %arg17: memref<16x32xf32, #tpu.memory_space<vmem>>) attributes {dimension_semantics = [#tpu.dimension_semantics<parallel>, #tpu.dimension_semantics<arbitrary>], iteration_bounds = array<i64: 2, 2>, scalar_prefetch = 0 : i64, scratch_operands = 2 : i64, tpu.core_type = #tpu.core_type<tc>, window_params = [{}, {transform_indices = @transform_1, window_bounds = array<i64: 1, 1, 32>}, {transform_indices = @transform_2, window_bounds = array<i64: 1, 1, 32>}, {transform_indices = @transform_3, window_bounds = array<i64: 1, 32, 96>}, {transform_indices = @transform_4, window_bounds = array<i64: 1, 1, 96>}, {transform_indices = @transform_5, window_bounds = array<i64: 1, 32, 32>}, {transform_indices = @transform_6, window_bounds = array<i64: 1, 1, 32>}, {transform_indices = @transform_7, window_bounds = array<i64: 1, 1, 32>}, {transform_indices = @transform_8, window_bounds = array<i64: 1, 1, 32>}, {transform_indices = @transform_9, window_bounds = array<i64: 1, 32, 64>}, {transform_indices = @transform_10, window_bounds = array<i64: 1, 1, 64>}, {transform_indices = @transform_11, window_bounds = array<i64: 1, 64, 32>}, {transform_indices = @transform_12, window_bounds = array<i64: 1, 1, 32>}, {transform_indices = @transform_13, window_bounds = array<i64: 16, 32>}]} {
    %c0_i32 = arith.constant 0 : i32
    %0 = arith.cmpi eq, %arg1, %c0_i32 : i32
    %1 = arith.extui %0 : i1 to i32
    %c0_i32_0 = arith.constant 0 : i32
    %2 = arith.cmpi ne, %1, %c0_i32_0 : i32
    scf.if %2 {
      %c16_i32 = arith.constant 16 : i32
      %223 = arith.muli %arg0, %c16_i32 : i32
      %224 = tpu.assume_multiple %223, 16 : i32
      "tpu.region"() ({
        %225 = tpu.sem_alloc : memref<!tpu.dma_semaphore, #tpu.memory_space<semaphore_mem>>
        %c0_i32_92 = arith.constant 0 : i32
        %226 = tpu.memref_slice %arg2[%224, %c0_i32_92] : memref<32x32xf32, #tpu.memory_space<any>> -> memref<16x32xf32, #tpu.memory_space<any>>
        tpu.enqueue_dma source(%226 : memref<16x32xf32, #tpu.memory_space<any>>) target(%arg16 : memref<16x32xf32, #tpu.memory_space<vmem>>) target_semaphore(%225 : memref<!tpu.dma_semaphore, #tpu.memory_space<semaphore_mem>>)
        %c0_i32_93 = arith.constant 0 : i32
        %227 = tpu.memref_slice %arg2[%224, %c0_i32_93] : memref<32x32xf32, #tpu.memory_space<any>> -> memref<16x32xf32, #tpu.memory_space<any>>
        tpu.wait_dma2 semaphore(%225 : memref<!tpu.dma_semaphore, #tpu.memory_space<semaphore_mem>>) src(%227 : memref<16x32xf32, #tpu.memory_space<any>>) dst(%arg16 : memref<16x32xf32, #tpu.memory_space<vmem>>)
        tpu.yield
      }) : () -> ()
    } else {
    }
    %c0 = arith.constant 0 : index
    %c0_1 = arith.constant 0 : index
    %3 = vector.load %arg16[%c0, %c0_1] : memref<16x32xf32, #tpu.memory_space<vmem>>, vector<16x32xf32>
    %c0_2 = arith.constant 0 : index
    %c0_3 = arith.constant 0 : index
    %c0_4 = arith.constant 0 : index
    %4 = vector.load %arg4[%c0_2, %c0_3, %c0_4] : memref<1x1x32xf32, #tpu.memory_space<vmem>>, vector<1x1x32xf32>
    %5 = vector.shape_cast %4 : vector<1x1x32xf32> to vector<1x32xf32>
    %c0_5 = arith.constant 0 : index
    %c0_6 = arith.constant 0 : index
    %c0_7 = arith.constant 0 : index
    %6 = vector.load %arg3[%c0_5, %c0_6, %c0_7] : memref<1x1x32xf32, #tpu.memory_space<vmem>>, vector<1x1x32xf32>
    %7 = vector.shape_cast %6 : vector<1x1x32xf32> to vector<1x32xf32>
    %8 = vector.broadcast %7 : vector<1x32xf32> to vector<16x32xf32>
    %9 = arith.mulf %8, %3 : vector<16x32xf32>
    %10 = math.tanh %9 : vector<16x32xf32>
    %11 = vector.broadcast %5 : vector<1x32xf32> to vector<16x32xf32>
    %12 = arith.mulf %11, %10 : vector<16x32xf32>
    %13 = arith.truncf %12 : vector<16x32xf32> to vector<16x32xbf16>
    %c0_8 = arith.constant 0 : index
    %c0_9 = arith.constant 0 : index
    %c0_10 = arith.constant 0 : index
    %14 = vector.load %arg5[%c0_8, %c0_9, %c0_10] : memref<1x32x96xbf16, #tpu.memory_space<vmem>>, vector<1x32x96xbf16>
    %15 = vector.shape_cast %14 : vector<1x32x96xbf16> to vector<32x96xbf16>
    %cst = arith.constant dense<0.000000e+00> : vector<16x96xf32>
    %16 = tpu.matmul %13, %15, %cst {dimension_numbers = #tpu.dot_dimension_numbers<[1], [0], [0], [1], [0, 0, 1, 1], [], []>} : vector<16x32xbf16>, vector<32x96xbf16>, vector<16x96xf32> -> vector<16x96xf32>
    %c0_11 = arith.constant 0 : index
    %c0_12 = arith.constant 0 : index
    %c0_13 = arith.constant 0 : index
    %17 = vector.load %arg6[%c0_11, %c0_12, %c0_13] : memref<1x1x96xf32, #tpu.memory_space<vmem>>, vector<1x1x96xf32>
    %18 = vector.shape_cast %17 : vector<1x1x96xf32> to vector<1x96xf32>
    %19 = vector.broadcast %18 : vector<1x96xf32> to vector<16x96xf32>
    %20 = arith.addf %16, %19 : vector<16x96xf32>
    %21 = vector.extract_strided_slice %20 {offsets = [0, 0], sizes = [8, 8], strides = [1, 1]} : vector<16x96xf32> to vector<8x8xf32>
    %22 = arith.truncf %21 : vector<8x8xf32> to vector<8x8xbf16>
    %23 = vector.extract_strided_slice %20 {offsets = [0, 32], sizes = [8, 8], strides = [1, 1]} : vector<16x96xf32> to vector<8x8xf32>
    %24 = arith.truncf %23 : vector<8x8xf32> to vector<8x8xbf16>
    %25 = vector.extract_strided_slice %20 {offsets = [0, 64], sizes = [8, 8], strides = [1, 1]} : vector<16x96xf32> to vector<8x8xf32>
    %26 = arith.truncf %25 : vector<8x8xf32> to vector<8x8xbf16>
    %cst_14 = arith.constant dense<0.000000e+00> : vector<8x8xf32>
    %27 = tpu.matmul %22, %24, %cst_14 {dimension_numbers = #tpu.dot_dimension_numbers<[1], [1], [0], [0], [0, 0, 1, 0], [], []>} : vector<8x8xbf16>, vector<8x8xbf16>, vector<8x8xf32> -> vector<8x8xf32>
    %cst_15 = arith.constant dense<0xFF800000> : vector<8xf32>
    %28 = vector.multi_reduction <maximumf>, %27, %cst_15 [1] : vector<8x8xf32> to vector<8xf32>
    %29 = vector.shape_cast %28 : vector<8xf32> to vector<8x1xf32>
    %30 = vector.broadcast %29 : vector<8x1xf32> to vector<8x8xf32>
    %31 = arith.subf %27, %30 : vector<8x8xf32>
    %32 = math.exp %31 : vector<8x8xf32>
    %cst_16 = arith.constant dense<0.000000e+00> : vector<8xf32>
    %33 = vector.multi_reduction <add>, %32, %cst_16 [1] : vector<8x8xf32> to vector<8xf32>
    %34 = vector.shape_cast %33 : vector<8xf32> to vector<8x1xf32>
    %35 = tpu.reciprocal %34 {approx = true} : vector<8x1xf32> -> vector<8x1xf32>
    %36 = arith.truncf %32 : vector<8x8xf32> to vector<8x8xbf16>
    %cst_17 = arith.constant dense<0.000000e+00> : vector<8x8xf32>
    %37 = tpu.matmul %36, %26, %cst_17 {dimension_numbers = #tpu.dot_dimension_numbers<[1], [0], [0], [1], [0, 0, 1, 1], [], []>} : vector<8x8xbf16>, vector<8x8xbf16>, vector<8x8xf32> -> vector<8x8xf32>
    %38 = vector.broadcast %35 : vector<8x1xf32> to vector<8x8xf32>
    %39 = arith.mulf %37, %38 : vector<8x8xf32>
    %c0_18 = arith.constant 0 : index
    %c0_19 = arith.constant 0 : index
    %40 = vector.load %arg17[%c0_18, %c0_19] : memref<16x32xf32, #tpu.memory_space<vmem>>, vector<8x8xf32>
    tpu.vector_store %arg17[%c0_18, %c0_19], %39 {strides = array<i32>} : memref<16x32xf32, #tpu.memory_space<vmem>>, vector<8x8xf32>,
    %41 = vector.extract_strided_slice %20 {offsets = [0, 8], sizes = [8, 8], strides = [1, 1]} : vector<16x96xf32> to vector<8x8xf32>
    %42 = arith.truncf %41 : vector<8x8xf32> to vector<8x8xbf16>
    %43 = vector.extract_strided_slice %20 {offsets = [0, 40], sizes = [8, 8], strides = [1, 1]} : vector<16x96xf32> to vector<8x8xf32>
    %44 = arith.truncf %43 : vector<8x8xf32> to vector<8x8xbf16>
    %45 = vector.extract_strided_slice %20 {offsets = [0, 72], sizes = [8, 8], strides = [1, 1]} : vector<16x96xf32> to vector<8x8xf32>
    %46 = arith.truncf %45 : vector<8x8xf32> to vector<8x8xbf16>
    %cst_20 = arith.constant dense<0.000000e+00> : vector<8x8xf32>
    %47 = tpu.matmul %42, %44, %cst_20 {dimension_numbers = #tpu.dot_dimension_numbers<[1], [1], [0], [0], [0, 0, 1, 0], [], []>} : vector<8x8xbf16>, vector<8x8xbf16>, vector<8x8xf32> -> vector<8x8xf32>
    %cst_21 = arith.constant dense<0xFF800000> : vector<8xf32>
    %48 = vector.multi_reduction <maximumf>, %47, %cst_21 [1] : vector<8x8xf32> to vector<8xf32>
    %49 = vector.shape_cast %48 : vector<8xf32> to vector<8x1xf32>
    %50 = vector.broadcast %49 : vector<8x1xf32> to vector<8x8xf32>
    %51 = arith.subf %47, %50 : vector<8x8xf32>
    %52 = math.exp %51 : vector<8x8xf32>
    %cst_22 = arith.constant dense<0.000000e+00> : vector<8xf32>
    %53 = vector.multi_reduction <add>, %52, %cst_22 [1] : vector<8x8xf32> to vector<8xf32>
    %54 = vector.shape_cast %53 : vector<8xf32> to vector<8x1xf32>
    %55 = tpu.reciprocal %54 {approx = true} : vector<8x1xf32> -> vector<8x1xf32>
    %56 = arith.truncf %52 : vector<8x8xf32> to vector<8x8xbf16>
    %cst_23 = arith.constant dense<0.000000e+00> : vector<8x8xf32>
    %57 = tpu.matmul %56, %46, %cst_23 {dimension_numbers = #tpu.dot_dimension_numbers<[1], [0], [0], [1], [0, 0, 1, 1], [], []>} : vector<8x8xbf16>, vector<8x8xbf16>, vector<8x8xf32> -> vector<8x8xf32>
    %58 = vector.broadcast %55 : vector<8x1xf32> to vector<8x8xf32>
    %59 = arith.mulf %57, %58 : vector<8x8xf32>
    %c0_24 = arith.constant 0 : index
    %c8 = arith.constant 8 : index
    %60 = vector.load %arg17[%c0_24, %c8] : memref<16x32xf32, #tpu.memory_space<vmem>>, vector<8x8xf32>
    tpu.vector_store %arg17[%c0_24, %c8], %59 {strides = array<i32>} : memref<16x32xf32, #tpu.memory_space<vmem>>, vector<8x8xf32>,
    %61 = vector.extract_strided_slice %20 {offsets = [0, 16], sizes = [8, 8], strides = [1, 1]} : vector<16x96xf32> to vector<8x8xf32>
    %62 = arith.truncf %61 : vector<8x8xf32> to vector<8x8xbf16>
    %63 = vector.extract_strided_slice %20 {offsets = [0, 48], sizes = [8, 8], strides = [1, 1]} : vector<16x96xf32> to vector<8x8xf32>
    %64 = arith.truncf %63 : vector<8x8xf32> to vector<8x8xbf16>
    %65 = vector.extract_strided_slice %20 {offsets = [0, 80], sizes = [8, 8], strides = [1, 1]} : vector<16x96xf32> to vector<8x8xf32>
    %66 = arith.truncf %65 : vector<8x8xf32> to vector<8x8xbf16>
    %cst_25 = arith.constant dense<0.000000e+00> : vector<8x8xf32>
    %67 = tpu.matmul %62, %64, %cst_25 {dimension_numbers = #tpu.dot_dimension_numbers<[1], [1], [0], [0], [0, 0, 1, 0], [], []>} : vector<8x8xbf16>, vector<8x8xbf16>, vector<8x8xf32> -> vector<8x8xf32>
    %cst_26 = arith.constant dense<0xFF800000> : vector<8xf32>
    %68 = vector.multi_reduction <maximumf>, %67, %cst_26 [1] : vector<8x8xf32> to vector<8xf32>
    %69 = vector.shape_cast %68 : vector<8xf32> to vector<8x1xf32>
    %70 = vector.broadcast %69 : vector<8x1xf32> to vector<8x8xf32>
    %71 = arith.subf %67, %70 : vector<8x8xf32>
    %72 = math.exp %71 : vector<8x8xf32>
    %cst_27 = arith.constant dense<0.000000e+00> : vector<8xf32>
    %73 = vector.multi_reduction <add>, %72, %cst_27 [1] : vector<8x8xf32> to vector<8xf32>
    %74 = vector.shape_cast %73 : vector<8xf32> to vector<8x1xf32>
    %75 = tpu.reciprocal %74 {approx = true} : vector<8x1xf32> -> vector<8x1xf32>
    %76 = arith.truncf %72 : vector<8x8xf32> to vector<8x8xbf16>
    %cst_28 = arith.constant dense<0.000000e+00> : vector<8x8xf32>
    %77 = tpu.matmul %76, %66, %cst_28 {dimension_numbers = #tpu.dot_dimension_numbers<[1], [0], [0], [1], [0, 0, 1, 1], [], []>} : vector<8x8xbf16>, vector<8x8xbf16>, vector<8x8xf32> -> vector<8x8xf32>
    %78 = vector.broadcast %75 : vector<8x1xf32> to vector<8x8xf32>
    %79 = arith.mulf %77, %78 : vector<8x8xf32>
    %c0_29 = arith.constant 0 : index
    %c16 = arith.constant 16 : index
    %80 = vector.load %arg17[%c0_29, %c16] : memref<16x32xf32, #tpu.memory_space<vmem>>, vector<8x8xf32>
    tpu.vector_store %arg17[%c0_29, %c16], %79 {strides = array<i32>} : memref<16x32xf32, #tpu.memory_space<vmem>>, vector<8x8xf32>,
    %81 = vector.extract_strided_slice %20 {offsets = [0, 24], sizes = [8, 8], strides = [1, 1]} : vector<16x96xf32> to vector<8x8xf32>
    %82 = arith.truncf %81 : vector<8x8xf32> to vector<8x8xbf16>
    %83 = vector.extract_strided_slice %20 {offsets = [0, 56], sizes = [8, 8], strides = [1, 1]} : vector<16x96xf32> to vector<8x8xf32>
    %84 = arith.truncf %83 : vector<8x8xf32> to vector<8x8xbf16>
    %85 = vector.extract_strided_slice %20 {offsets = [0, 88], sizes = [8, 8], strides = [1, 1]} : vector<16x96xf32> to vector<8x8xf32>
    %86 = arith.truncf %85 : vector<8x8xf32> to vector<8x8xbf16>
    %cst_30 = arith.constant dense<0.000000e+00> : vector<8x8xf32>
    %87 = tpu.matmul %82, %84, %cst_30 {dimension_numbers = #tpu.dot_dimension_numbers<[1], [1], [0], [0], [0, 0, 1, 0], [], []>} : vector<8x8xbf16>, vector<8x8xbf16>, vector<8x8xf32> -> vector<8x8xf32>
    %cst_31 = arith.constant dense<0xFF800000> : vector<8xf32>
    %88 = vector.multi_reduction <maximumf>, %87, %cst_31 [1] : vector<8x8xf32> to vector<8xf32>
    %89 = vector.shape_cast %88 : vector<8xf32> to vector<8x1xf32>
    %90 = vector.broadcast %89 : vector<8x1xf32> to vector<8x8xf32>
    %91 = arith.subf %87, %90 : vector<8x8xf32>
    %92 = math.exp %91 : vector<8x8xf32>
    %cst_32 = arith.constant dense<0.000000e+00> : vector<8xf32>
    %93 = vector.multi_reduction <add>, %92, %cst_32 [1] : vector<8x8xf32> to vector<8xf32>
    %94 = vector.shape_cast %93 : vector<8xf32> to vector<8x1xf32>
    %95 = tpu.reciprocal %94 {approx = true} : vector<8x1xf32> -> vector<8x1xf32>
    %96 = arith.truncf %92 : vector<8x8xf32> to vector<8x8xbf16>
    %cst_33 = arith.constant dense<0.000000e+00> : vector<8x8xf32>
    %97 = tpu.matmul %96, %86, %cst_33 {dimension_numbers = #tpu.dot_dimension_numbers<[1], [0], [0], [1], [0, 0, 1, 1], [], []>} : vector<8x8xbf16>, vector<8x8xbf16>, vector<8x8xf32> -> vector<8x8xf32>
    %98 = vector.broadcast %95 : vector<8x1xf32> to vector<8x8xf32>
    %99 = arith.mulf %97, %98 : vector<8x8xf32>
    %c0_34 = arith.constant 0 : index
    %c24 = arith.constant 24 : index
    %100 = vector.load %arg17[%c0_34, %c24] : memref<16x32xf32, #tpu.memory_space<vmem>>, vector<8x8xf32>
    tpu.vector_store %arg17[%c0_34, %c24], %99 {strides = array<i32>} : memref<16x32xf32, #tpu.memory_space<vmem>>, vector<8x8xf32>,
    %101 = vector.extract_strided_slice %20 {offsets = [8, 0], sizes = [8, 8], strides = [1, 1]} : vector<16x96xf32> to vector<8x8xf32>
    %102 = arith.truncf %101 : vector<8x8xf32> to vector<8x8xbf16>
    %103 = vector.extract_strided_slice %20 {offsets = [8, 32], sizes = [8, 8], strides = [1, 1]} : vector<16x96xf32> to vector<8x8xf32>
    %104 = arith.truncf %103 : vector<8x8xf32> to vector<8x8xbf16>
    %105 = vector.extract_strided_slice %20 {offsets = [8, 64], sizes = [8, 8], strides = [1, 1]} : vector<16x96xf32> to vector<8x8xf32>
    %106 = arith.truncf %105 : vector<8x8xf32> to vector<8x8xbf16>
    %cst_35 = arith.constant dense<0.000000e+00> : vector<8x8xf32>
    %107 = tpu.matmul %102, %104, %cst_35 {dimension_numbers = #tpu.dot_dimension_numbers<[1], [1], [0], [0], [0, 0, 1, 0], [], []>} : vector<8x8xbf16>, vector<8x8xbf16>, vector<8x8xf32> -> vector<8x8xf32>
    %cst_36 = arith.constant dense<0xFF800000> : vector<8xf32>
    %108 = vector.multi_reduction <maximumf>, %107, %cst_36 [1] : vector<8x8xf32> to vector<8xf32>
    %109 = vector.shape_cast %108 : vector<8xf32> to vector<8x1xf32>
    %110 = vector.broadcast %109 : vector<8x1xf32> to vector<8x8xf32>
    %111 = arith.subf %107, %110 : vector<8x8xf32>
    %112 = math.exp %111 : vector<8x8xf32>
    %cst_37 = arith.constant dense<0.000000e+00> : vector<8xf32>
    %113 = vector.multi_reduction <add>, %112, %cst_37 [1] : vector<8x8xf32> to vector<8xf32>
    %114 = vector.shape_cast %113 : vector<8xf32> to vector<8x1xf32>
    %115 = tpu.reciprocal %114 {approx = true} : vector<8x1xf32> -> vector<8x1xf32>
    %116 = arith.truncf %112 : vector<8x8xf32> to vector<8x8xbf16>
    %cst_38 = arith.constant dense<0.000000e+00> : vector<8x8xf32>
    %117 = tpu.matmul %116, %106, %cst_38 {dimension_numbers = #tpu.dot_dimension_numbers<[1], [0], [0], [1], [0, 0, 1, 1], [], []>} : vector<8x8xbf16>, vector<8x8xbf16>, vector<8x8xf32> -> vector<8x8xf32>
    %118 = vector.broadcast %115 : vector<8x1xf32> to vector<8x8xf32>
    %119 = arith.mulf %117, %118 : vector<8x8xf32>
    %c8_39 = arith.constant 8 : index
    %c0_40 = arith.constant 0 : index
    %120 = vector.load %arg17[%c8_39, %c0_40] : memref<16x32xf32, #tpu.memory_space<vmem>>, vector<8x8xf32>
    tpu.vector_store %arg17[%c8_39, %c0_40], %119 {strides = array<i32>} : memref<16x32xf32, #tpu.memory_space<vmem>>, vector<8x8xf32>,
    %121 = vector.extract_strided_slice %20 {offsets = [8, 8], sizes = [8, 8], strides = [1, 1]} : vector<16x96xf32> to vector<8x8xf32>
    %122 = arith.truncf %121 : vector<8x8xf32> to vector<8x8xbf16>
    %123 = vector.extract_strided_slice %20 {offsets = [8, 40], sizes = [8, 8], strides = [1, 1]} : vector<16x96xf32> to vector<8x8xf32>
    %124 = arith.truncf %123 : vector<8x8xf32> to vector<8x8xbf16>
    %125 = vector.extract_strided_slice %20 {offsets = [8, 72], sizes = [8, 8], strides = [1, 1]} : vector<16x96xf32> to vector<8x8xf32>
    %126 = arith.truncf %125 : vector<8x8xf32> to vector<8x8xbf16>
    %cst_41 = arith.constant dense<0.000000e+00> : vector<8x8xf32>
    %127 = tpu.matmul %122, %124, %cst_41 {dimension_numbers = #tpu.dot_dimension_numbers<[1], [1], [0], [0], [0, 0, 1, 0], [], []>} : vector<8x8xbf16>, vector<8x8xbf16>, vector<8x8xf32> -> vector<8x8xf32>
    %cst_42 = arith.constant dense<0xFF800000> : vector<8xf32>
    %128 = vector.multi_reduction <maximumf>, %127, %cst_42 [1] : vector<8x8xf32> to vector<8xf32>
    %129 = vector.shape_cast %128 : vector<8xf32> to vector<8x1xf32>
    %130 = vector.broadcast %129 : vector<8x1xf32> to vector<8x8xf32>
    %131 = arith.subf %127, %130 : vector<8x8xf32>
    %132 = math.exp %131 : vector<8x8xf32>
    %cst_43 = arith.constant dense<0.000000e+00> : vector<8xf32>
    %133 = vector.multi_reduction <add>, %132, %cst_43 [1] : vector<8x8xf32> to vector<8xf32>
    %134 = vector.shape_cast %133 : vector<8xf32> to vector<8x1xf32>
    %135 = tpu.reciprocal %134 {approx = true} : vector<8x1xf32> -> vector<8x1xf32>
    %136 = arith.truncf %132 : vector<8x8xf32> to vector<8x8xbf16>
    %cst_44 = arith.constant dense<0.000000e+00> : vector<8x8xf32>
    %137 = tpu.matmul %136, %126, %cst_44 {dimension_numbers = #tpu.dot_dimension_numbers<[1], [0], [0], [1], [0, 0, 1, 1], [], []>} : vector<8x8xbf16>, vector<8x8xbf16>, vector<8x8xf32> -> vector<8x8xf32>
    %138 = vector.broadcast %135 : vector<8x1xf32> to vector<8x8xf32>
    %139 = arith.mulf %137, %138 : vector<8x8xf32>
    %c8_45 = arith.constant 8 : index
    %c8_46 = arith.constant 8 : index
    %140 = vector.load %arg17[%c8_45, %c8_46] : memref<16x32xf32, #tpu.memory_space<vmem>>, vector<8x8xf32>
    tpu.vector_store %arg17[%c8_45, %c8_46], %139 {strides = array<i32>} : memref<16x32xf32, #tpu.memory_space<vmem>>, vector<8x8xf32>,
    %141 = vector.extract_strided_slice %20 {offsets = [8, 16], sizes = [8, 8], strides = [1, 1]} : vector<16x96xf32> to vector<8x8xf32>
    %142 = arith.truncf %141 : vector<8x8xf32> to vector<8x8xbf16>
    %143 = vector.extract_strided_slice %20 {offsets = [8, 48], sizes = [8, 8], strides = [1, 1]} : vector<16x96xf32> to vector<8x8xf32>
    %144 = arith.truncf %143 : vector<8x8xf32> to vector<8x8xbf16>
    %145 = vector.extract_strided_slice %20 {offsets = [8, 80], sizes = [8, 8], strides = [1, 1]} : vector<16x96xf32> to vector<8x8xf32>
    %146 = arith.truncf %145 : vector<8x8xf32> to vector<8x8xbf16>
    %cst_47 = arith.constant dense<0.000000e+00> : vector<8x8xf32>
    %147 = tpu.matmul %142, %144, %cst_47 {dimension_numbers = #tpu.dot_dimension_numbers<[1], [1], [0], [0], [0, 0, 1, 0], [], []>} : vector<8x8xbf16>, vector<8x8xbf16>, vector<8x8xf32> -> vector<8x8xf32>
    %cst_48 = arith.constant dense<0xFF800000> : vector<8xf32>
    %148 = vector.multi_reduction <maximumf>, %147, %cst_48 [1] : vector<8x8xf32> to vector<8xf32>
    %149 = vector.shape_cast %148 : vector<8xf32> to vector<8x1xf32>
    %150 = vector.broadcast %149 : vector<8x1xf32> to vector<8x8xf32>
    %151 = arith.subf %147, %150 : vector<8x8xf32>
    %152 = math.exp %151 : vector<8x8xf32>
    %cst_49 = arith.constant dense<0.000000e+00> : vector<8xf32>
    %153 = vector.multi_reduction <add>, %152, %cst_49 [1] : vector<8x8xf32> to vector<8xf32>
    %154 = vector.shape_cast %153 : vector<8xf32> to vector<8x1xf32>
    %155 = tpu.reciprocal %154 {approx = true} : vector<8x1xf32> -> vector<8x1xf32>
    %156 = arith.truncf %152 : vector<8x8xf32> to vector<8x8xbf16>
    %cst_50 = arith.constant dense<0.000000e+00> : vector<8x8xf32>
    %157 = tpu.matmul %156, %146, %cst_50 {dimension_numbers = #tpu.dot_dimension_numbers<[1], [0], [0], [1], [0, 0, 1, 1], [], []>} : vector<8x8xbf16>, vector<8x8xbf16>, vector<8x8xf32> -> vector<8x8xf32>
    %158 = vector.broadcast %155 : vector<8x1xf32> to vector<8x8xf32>
    %159 = arith.mulf %157, %158 : vector<8x8xf32>
    %c8_51 = arith.constant 8 : index
    %c16_52 = arith.constant 16 : index
    %160 = vector.load %arg17[%c8_51, %c16_52] : memref<16x32xf32, #tpu.memory_space<vmem>>, vector<8x8xf32>
    tpu.vector_store %arg17[%c8_51, %c16_52], %159 {strides = array<i32>} : memref<16x32xf32, #tpu.memory_space<vmem>>, vector<8x8xf32>,
    %161 = vector.extract_strided_slice %20 {offsets = [8, 24], sizes = [8, 8], strides = [1, 1]} : vector<16x96xf32> to vector<8x8xf32>
    %162 = arith.truncf %161 : vector<8x8xf32> to vector<8x8xbf16>
    %163 = vector.extract_strided_slice %20 {offsets = [8, 56], sizes = [8, 8], strides = [1, 1]} : vector<16x96xf32> to vector<8x8xf32>
    %164 = arith.truncf %163 : vector<8x8xf32> to vector<8x8xbf16>
    %165 = vector.extract_strided_slice %20 {offsets = [8, 88], sizes = [8, 8], strides = [1, 1]} : vector<16x96xf32> to vector<8x8xf32>
    %166 = arith.truncf %165 : vector<8x8xf32> to vector<8x8xbf16>
    %cst_53 = arith.constant dense<0.000000e+00> : vector<8x8xf32>
    %167 = tpu.matmul %162, %164, %cst_53 {dimension_numbers = #tpu.dot_dimension_numbers<[1], [1], [0], [0], [0, 0, 1, 0], [], []>} : vector<8x8xbf16>, vector<8x8xbf16>, vector<8x8xf32> -> vector<8x8xf32>
    %cst_54 = arith.constant dense<0xFF800000> : vector<8xf32>
    %168 = vector.multi_reduction <maximumf>, %167, %cst_54 [1] : vector<8x8xf32> to vector<8xf32>
    %169 = vector.shape_cast %168 : vector<8xf32> to vector<8x1xf32>
    %170 = vector.broadcast %169 : vector<8x1xf32> to vector<8x8xf32>
    %171 = arith.subf %167, %170 : vector<8x8xf32>
    %172 = math.exp %171 : vector<8x8xf32>
    %cst_55 = arith.constant dense<0.000000e+00> : vector<8xf32>
    %173 = vector.multi_reduction <add>, %172, %cst_55 [1] : vector<8x8xf32> to vector<8xf32>
    %174 = vector.shape_cast %173 : vector<8xf32> to vector<8x1xf32>
    %175 = tpu.reciprocal %174 {approx = true} : vector<8x1xf32> -> vector<8x1xf32>
    %176 = arith.truncf %172 : vector<8x8xf32> to vector<8x8xbf16>
    %cst_56 = arith.constant dense<0.000000e+00> : vector<8x8xf32>
    %177 = tpu.matmul %176, %166, %cst_56 {dimension_numbers = #tpu.dot_dimension_numbers<[1], [0], [0], [1], [0, 0, 1, 1], [], []>} : vector<8x8xbf16>, vector<8x8xbf16>, vector<8x8xf32> -> vector<8x8xf32>
    %178 = vector.broadcast %175 : vector<8x1xf32> to vector<8x8xf32>
    %179 = arith.mulf %177, %178 : vector<8x8xf32>
    %c8_57 = arith.constant 8 : index
    %c24_58 = arith.constant 24 : index
    %180 = vector.load %arg17[%c8_57, %c24_58] : memref<16x32xf32, #tpu.memory_space<vmem>>, vector<8x8xf32>
    tpu.vector_store %arg17[%c8_57, %c24_58], %179 {strides = array<i32>} : memref<16x32xf32, #tpu.memory_space<vmem>>, vector<8x8xf32>,
    %c0_59 = arith.constant 0 : index
    %c0_60 = arith.constant 0 : index
    %181 = vector.load %arg17[%c0_59, %c0_60] : memref<16x32xf32, #tpu.memory_space<vmem>>, vector<16x32xf32>
    %182 = arith.truncf %181 : vector<16x32xf32> to vector<16x32xbf16>
    %c0_61 = arith.constant 0 : index
    %c0_62 = arith.constant 0 : index
    %c0_63 = arith.constant 0 : index
    %183 = vector.load %arg7[%c0_61, %c0_62, %c0_63] : memref<1x32x32xbf16, #tpu.memory_space<vmem>>, vector<1x32x32xbf16>
    %184 = vector.shape_cast %183 : vector<1x32x32xbf16> to vector<32x32xbf16>
    %cst_64 = arith.constant dense<0.000000e+00> : vector<16x32xf32>
    %185 = tpu.matmul %182, %184, %cst_64 {dimension_numbers = #tpu.dot_dimension_numbers<[1], [0], [0], [1], [0, 0, 1, 1], [], []>} : vector<16x32xbf16>, vector<32x32xbf16>, vector<16x32xf32> -> vector<16x32xf32>
    %c0_65 = arith.constant 0 : index
    %c0_66 = arith.constant 0 : index
    %c0_67 = arith.constant 0 : index
    %186 = vector.load %arg8[%c0_65, %c0_66, %c0_67] : memref<1x1x32xf32, #tpu.memory_space<vmem>>, vector<1x1x32xf32>
    %187 = vector.shape_cast %186 : vector<1x1x32xf32> to vector<1x32xf32>
    %188 = vector.broadcast %187 : vector<1x32xf32> to vector<16x32xf32>
    %189 = arith.addf %185, %188 : vector<16x32xf32>
    %190 = arith.addf %3, %189 : vector<16x32xf32>
    %c0_68 = arith.constant 0 : index
    %c0_69 = arith.constant 0 : index
    %c0_70 = arith.constant 0 : index
    %191 = vector.load %arg10[%c0_68, %c0_69, %c0_70] : memref<1x1x32xf32, #tpu.memory_space<vmem>>, vector<1x1x32xf32>
    %192 = vector.shape_cast %191 : vector<1x1x32xf32> to vector<1x32xf32>
    %c0_71 = arith.constant 0 : index
    %c0_72 = arith.constant 0 : index
    %c0_73 = arith.constant 0 : index
    %193 = vector.load %arg9[%c0_71, %c0_72, %c0_73] : memref<1x1x32xf32, #tpu.memory_space<vmem>>, vector<1x1x32xf32>
    %194 = vector.shape_cast %193 : vector<1x1x32xf32> to vector<1x32xf32>
    %195 = vector.broadcast %194 : vector<1x32xf32> to vector<16x32xf32>
    %196 = arith.mulf %195, %190 : vector<16x32xf32>
    %197 = math.tanh %196 : vector<16x32xf32>
    %198 = vector.broadcast %192 : vector<1x32xf32> to vector<16x32xf32>
    %199 = arith.mulf %198, %197 : vector<16x32xf32>
    %200 = arith.truncf %199 : vector<16x32xf32> to vector<16x32xbf16>
    %c0_74 = arith.constant 0 : index
    %c0_75 = arith.constant 0 : index
    %c0_76 = arith.constant 0 : index
    %201 = vector.load %arg11[%c0_74, %c0_75, %c0_76] : memref<1x32x64xbf16, #tpu.memory_space<vmem>>, vector<1x32x64xbf16>
    %202 = vector.shape_cast %201 : vector<1x32x64xbf16> to vector<32x64xbf16>
    %cst_77 = arith.constant dense<0.000000e+00> : vector<16x64xf32>
    %203 = tpu.matmul %200, %202, %cst_77 {dimension_numbers = #tpu.dot_dimension_numbers<[1], [0], [0], [1], [0, 0, 1, 1], [], []>} : vector<16x32xbf16>, vector<32x64xbf16>, vector<16x64xf32> -> vector<16x64xf32>
    %c0_78 = arith.constant 0 : index
    %c0_79 = arith.constant 0 : index
    %c0_80 = arith.constant 0 : index
    %204 = vector.load %arg12[%c0_78, %c0_79, %c0_80] : memref<1x1x64xf32, #tpu.memory_space<vmem>>, vector<1x1x64xf32>
    %205 = vector.shape_cast %204 : vector<1x1x64xf32> to vector<1x64xf32>
    %206 = vector.broadcast %205 : vector<1x64xf32> to vector<16x64xf32>
    %207 = arith.addf %203, %206 : vector<16x64xf32>
    %cst_81 = arith.constant 0.000000e+00 : f32
    %208 = vector.broadcast %cst_81 : f32 to vector<16x64xf32>
    %209 = arith.maximumf %207, %208 : vector<16x64xf32>
    %210 = arith.truncf %209 : vector<16x64xf32> to vector<16x64xbf16>
    %c0_82 = arith.constant 0 : index
    %c0_83 = arith.constant 0 : index
    %c0_84 = arith.constant 0 : index
    %211 = vector.load %arg13[%c0_82, %c0_83, %c0_84] : memref<1x64x32xbf16, #tpu.memory_space<vmem>>, vector<1x64x32xbf16>
    %212 = vector.shape_cast %211 : vector<1x64x32xbf16> to vector<64x32xbf16>
    %cst_85 = arith.constant dense<0.000000e+00> : vector<16x32xf32>
    %213 = tpu.matmul %210, %212, %cst_85 {dimension_numbers = #tpu.dot_dimension_numbers<[1], [0], [0], [1], [0, 0, 1, 1], [], []>} : vector<16x64xbf16>, vector<64x32xbf16>, vector<16x32xf32> -> vector<16x32xf32>
    %c0_86 = arith.constant 0 : index
    %c0_87 = arith.constant 0 : index
    %c0_88 = arith.constant 0 : index
    %214 = vector.load %arg14[%c0_86, %c0_87, %c0_88] : memref<1x1x32xf32, #tpu.memory_space<vmem>>, vector<1x1x32xf32>
    %215 = vector.shape_cast %214 : vector<1x1x32xf32> to vector<1x32xf32>
    %216 = vector.broadcast %215 : vector<1x32xf32> to vector<16x32xf32>
    %217 = arith.addf %213, %216 : vector<16x32xf32>
    %218 = arith.addf %190, %217 : vector<16x32xf32>
    %c0_89 = arith.constant 0 : index
    %c0_90 = arith.constant 0 : index
    %219 = vector.load %arg16[%c0_89, %c0_90] : memref<16x32xf32, #tpu.memory_space<vmem>>, vector<16x32xf32>
    tpu.vector_store %arg16[%c0_89, %c0_90], %218 {strides = array<i32>} : memref<16x32xf32, #tpu.memory_space<vmem>>, vector<16x32xf32>,
    %c1_i32 = arith.constant 1 : i32
    %220 = arith.cmpi eq, %arg1, %c1_i32 : i32
    %221 = arith.extui %220 : i1 to i32
    %c0_i32_91 = arith.constant 0 : i32
    %222 = arith.cmpi ne, %221, %c0_i32_91 : i32
    scf.if %222 {
      %c0_92 = arith.constant 0 : index
      %c0_93 = arith.constant 0 : index
      %223 = vector.load %arg15[%c0_92, %c0_93] : memref<16x32xf32, #tpu.memory_space<vmem>>, vector<16x32xf32>
      tpu.vector_store %arg15[%c0_92, %c0_93], %218 {strides = array<i32>} : memref<16x32xf32, #tpu.memory_space<vmem>>, vector<16x32xf32>,
    } else {
    }
    return
  }
  func.func @transform_1(%arg0: i32, %arg1: i32) -> (i32, i32, i32) {
    %c0_i32 = arith.constant 0 : i32
    %c0_i32_0 = arith.constant 0 : i32
    %c0_i32_1 = arith.constant 0 : i32
    return %arg1, %c0_i32, %c0_i32_0 : i32, i32, i32
  }
  func.func @transform_2(%arg0: i32, %arg1: i32) -> (i32, i32, i32) {
    %c0_i32 = arith.constant 0 : i32
    %c0_i32_0 = arith.constant 0 : i32
    %c0_i32_1 = arith.constant 0 : i32
    return %arg1, %c0_i32, %c0_i32_0 : i32, i32, i32
  }
  func.func @transform_3(%arg0: i32, %arg1: i32) -> (i32, i32, i32) {
    %c0_i32 = arith.constant 0 : i32
    %c0_i32_0 = arith.constant 0 : i32
    %c0_i32_1 = arith.constant 0 : i32
    return %arg1, %c0_i32, %c0_i32_0 : i32, i32, i32
  }
  func.func @transform_4(%arg0: i32, %arg1: i32) -> (i32, i32, i32) {
    %c0_i32 = arith.constant 0 : i32
    %c0_i32_0 = arith.constant 0 : i32
    %c0_i32_1 = arith.constant 0 : i32
    return %arg1, %c0_i32, %c0_i32_0 : i32, i32, i32
  }
  func.func @transform_5(%arg0: i32, %arg1: i32) -> (i32, i32, i32) {
    %c0_i32 = arith.constant 0 : i32
    %c0_i32_0 = arith.constant 0 : i32
    %c0_i32_1 = arith.constant 0 : i32
    return %arg1, %c0_i32, %c0_i32_0 : i32, i32, i32
  }
  func.func @transform_6(%arg0: i32, %arg1: i32) -> (i32, i32, i32) {
    %c0_i32 = arith.constant 0 : i32
    %c0_i32_0 = arith.constant 0 : i32
    %c0_i32_1 = arith.constant 0 : i32
    return %arg1, %c0_i32, %c0_i32_0 : i32, i32, i32
  }
  func.func @transform_7(%arg0: i32, %arg1: i32) -> (i32, i32, i32) {
    %c0_i32 = arith.constant 0 : i32
    %c0_i32_0 = arith.constant 0 : i32
    %c0_i32_1 = arith.constant 0 : i32
    return %arg1, %c0_i32, %c0_i32_0 : i32, i32, i32
  }
  func.func @transform_8(%arg0: i32, %arg1: i32) -> (i32, i32, i32) {
    %c0_i32 = arith.constant 0 : i32
    %c0_i32_0 = arith.constant 0 : i32
    %c0_i32_1 = arith.constant 0 : i32
    return %arg1, %c0_i32, %c0_i32_0 : i32, i32, i32
  }
  func.func @transform_9(%arg0: i32, %arg1: i32) -> (i32, i32, i32) {
    %c0_i32 = arith.constant 0 : i32
    %c0_i32_0 = arith.constant 0 : i32
    %c0_i32_1 = arith.constant 0 : i32
    return %arg1, %c0_i32, %c0_i32_0 : i32, i32, i32
  }
  func.func @transform_10(%arg0: i32, %arg1: i32) -> (i32, i32, i32) {
    %c0_i32 = arith.constant 0 : i32
    %c0_i32_0 = arith.constant 0 : i32
    %c0_i32_1 = arith.constant 0 : i32
    return %arg1, %c0_i32, %c0_i32_0 : i32, i32, i32
  }
  func.func @transform_11(%arg0: i32, %arg1: i32) -> (i32, i32, i32) {
    %c0_i32 = arith.constant 0 : i32
    %c0_i32_0 = arith.constant 0 : i32
    %c0_i32_1 = arith.constant 0 : i32
    return %arg1, %c0_i32, %c0_i32_0 : i32, i32, i32
  }
  func.func @transform_12(%arg0: i32, %arg1: i32) -> (i32, i32, i32) {
    %c0_i32 = arith.constant 0 : i32
    %c0_i32_0 = arith.constant 0 : i32
    %c0_i32_1 = arith.constant 0 : i32
    return %arg1, %c0_i32, %c0_i32_0 : i32, i32, i32
  }
  func.func @transform_13(%arg0: i32, %arg1: i32) -> (i32, i32) {
    %c0_i32 = arith.constant 0 : i32
    %c0_i32_0 = arith.constant 0 : i32
    return %arg0, %c0_i32 : i32, i32
  }
}

</mosaic_0001>

<bundles_post_ra>
// kernel: tpu_custom_call.1
= control target key start
LH: loop header
LB: loop body
LE: loop exit
PB: predicated region body
PF: predicated region fallthrough
CT: control target
= control target key end

     0   :  { %s3416_s0 = inlined_call_operand.vmem [shape: f32[32,32], index: 0, kind: input, shape index: {}]   ;;  %s3417_s1 = inlined_call_operand.hbm [shape: f32[2,1,32], index: 1, kind: input, shape index: {}]   ;;  %s3418_s2 = inlined_call_operand.vmem [shape: f32[2,1,32], index: 2, kind: input, shape index: {}]   ;;  %s3419_s3 = inlined_call_operand.vmem [shape: bf16[2,32,96], index: 3, kind: input, shape index: {}]   ;;  %s3420_s4 = inlined_call_operand.vmem [shape: f32[2,1,96], index: 4, kind: input, shape index: {}]   ;;  %s3421_s5 = inlined_call_operand.vmem [shape: bf16[2,32,32], index: 5, kind: input, shape index: {}]   ;;  %s3422_s6 = inlined_call_operand.vmem [shape: f32[2,1,32], index: 6, kind: input, shape index: {}]   ;;  %s3423_s7 = inlined_call_operand.vmem [shape: f32[2,1,32], index: 7, kind: input, shape index: {}]   ;;  %s3424_s8 = inlined_call_operand.vmem [shape: f32[2,1,32], index: 8, kind: input, shape index: {}]   ;;  %s3425_s9 = inlined_call_operand.hbm [shape: bf16[2,32,64], index: 9, kind: input, shape index: {}]   ;;  %s3426_s10 = inlined_call_operand.vmem [shape: f32[2,1,64], index: 10, kind: input, shape index: {}]   ;;  %s3427_s11 = inlined_call_operand.vmem [shape: bf16[2,64,32], index: 11, kind: input, shape index: {}]   ;;  %s3428_s12 = inlined_call_operand.vmem [shape: f32[2,1,32], index: 12, kind: input, shape index: {}]   ;;  %s3429_s13 = inlined_call_operand.hbm [shape: f32[32,32], index: 13, kind: output, shape index: {}]  }
   0x1   :  { %3446 = sst [smem:[#allocation31_spill]] %s3416_s0 }
   0x2   :  { %3447 = sst [smem:[#allocation32_spill]] %s3417_s1 }
   0x3   :  { %3448 = sst [smem:[#allocation33_spill]] %s3419_s3 }
   0x4   :  { %3449 = sst [smem:[#allocation34_spill]] %s3421_s5 }
   0x5   :  { %3450 = sst [smem:[#allocation35_spill]] %s3425_s9 }
   0x6   :  { %3451 = sst [smem:[#allocation36_spill]] %s3428_s12 }
   0x7   :  { %3452 = sst [smem:[#allocation37_spill]] %s3429_s13 }
   0x8   :  { %18 = vsyncpa [#allocation5], 0 }
   0x9   :  { %20 = vsyncpa [#allocation5 + $0x1], 0 }
   0xa   :  { %21 = vsyncpa [#allocation8], 0 }
   0xb   :  { %23 = vsyncpa [#allocation8 + $0x1], 0 }
   0xc   :  { %24 = vsyncpa [#allocation6], 0 }
   0xd   :  { %26 = vsyncpa [#allocation6 + $0x1], 0  ;;  %s2883_s25 = smov 0   ;;  %s2885_s26 = smov 0  }
   0xe   :  { %s2887_s27 = smov 0   ;;  %s2889_s28 = smov 0  }
   0xf   :  { %s2891_s29 = smov 0   ;;  %s2893_s30 = smov 0  }
  0x10   :  { %s2895_s14 = smov 0   ;;  %s2897_s15 = smov 0  }
  0x11   :  { %s2899_s16 = smov 0   ;;  %s2901_s17 = smov 0  }
  0x12   :  { %s2903_s18 = smov 0  }
  0x13 LB: > { %3453 = sst [smem:[#allocation16_spill]] %s2749_s25  ;;  %s2185_s19 = sadd.s32 4294967295, %s2789_s18   ;;  %s2789_s18 = sphi %s2903_s18, %s32_s18   ;;  %s2785_s17 = sphi %s2901_s17, %s3504_s17   ;;  %s2781_s16 = sphi %s2899_s16, %s3503_s16   ;;  %s2777_s15 = sphi %s2897_s15, %s3502_s15   ;;  %s2773_s14 = sphi %s2895_s14, %s3501_s14   ;;  %s2769_s30 = sphi %s2893_s30, %s3500_s30   ;;  %s2765_s29 = sphi %s2891_s29, %s3499_s29   ;;  %s2761_s28 = sphi %s2889_s28, %s3498_s28   ;;  %s2757_s27 = sphi %s2887_s27, %s3497_s27   ;;  %s2753_s26 = sphi %s2885_s26, %s3496_s26   ;;  %s2749_s25 = sphi %s2883_s25, %s3495_s25  }
  0x14   : > { %3454 = sst [smem:[#allocation17_spill]] %s2753_s26  ;;  %s2186_s20 = sadd.s32 4294967294, %s2789_s18  }
  0x15   : > { %3455 = sst [smem:[#allocation18_spill]] %s2757_s27  ;;  %s41_s21 = sadd.s32 1, %s2781_s16 }
  0x16   : > { %3456 = sst [smem:[#allocation19_spill]] %s2765_s29  ;;  %s44_s22 = sadd.s32 1, %s2785_s17 }
  0x17   : > { %3457 = sst [smem:[#allocation20_spill]] %s2769_s30  ;;  %p42_p0 = scmp.ge.s32.totalorder %s41_s21, 2 }
  0x18   : > { %3458 = sst [smem:[#allocation21_spill]] %s2777_s15  ;;  %s51_s23 = sadd.s32 1, %s2769_s30 }
  0x19   : > { %3459 = sst [smem:[#allocation22_spill]] %s2781_s16  ;;  %p58_p1 = scmp.ne.s32.totalorder %s2769_s30, %s2765_s29 }
  0x1a   : > { %3460 = sst [smem:[#allocation23_spill]] %s2785_s17  ;;  %p59_p2 = scmp.eq.s32.totalorder %s2789_s18, 0 }
  0x1b   : > { %3461 = sst [smem:[#allocation24_spill]] %s2789_s18  ;;  %s3506_s21 = smov (%p42_p0, %s41_s21), 0 }
  0x1c   : > { %3462 = sst [smem:[#allocation25_spill]] %s3506_s21  ;;  %s3508_s22 = smov (!%p42_p0, %s44_s22), %s2785_s17 }
  0x1d   : > { %s48_s24 = ssub.s32 %s2781_s16, %s3506_s21  ;;  %p2949_p3 = por %p59_p2, %p58_p1 }
  0x1e   : > { %p46_p4 = scmp.ge.s32.totalorder %s3508_s22, 2  ;;  %p49_p5 = scmp.eq.s32.totalorder %s48_s24, 0 }
  0x1f   : > { %p64_p6 = scmp.ne.s32.totalorder %s2765_s29, %s2761_s28  ;;  %p65_p7 = scmp.eq.s32.totalorder %s2185_s19, 0 }
  0x20   : > { %s3510_s22 = smov (%p46_p4, %s3508_s22), 0  ;;  %s363_s12 = sadd.s32 1, %s2757_s27 }
  0x21   : > { %3464 = sst [smem:[#allocation26_spill]] %s3510_s22  ;;  %p2959_p8 = por %p65_p7, %p64_p6 }
  0x22   : > { %s2957_s0 = scalar_select %p49_p5, %s2769_s30, %s51_s23  }
  0x23   : > { %s360_s15 = ssub.s32 %s2785_s17, %s3510_s22  ;;  %p373_p10 = scmp.ne.s32.totalorder %s2757_s27, %s2753_s26 }
  0x24   : > { %3465 = sst [smem:[#allocation27_spill]] %s2957_s0  ;;  %p361_p9 = scmp.eq.s32.totalorder %s360_s15, 0 }
  0x25   : > { %p374_p11 = scmp.eq.s32.totalorder %s2185_s19, 3  ;;  %p379_p13 = scmp.ne.s32.totalorder %s2753_s26, %s2749_s25 }
  0x26   : > { %s2969_s28 = scalar_select %p361_p9, %s2757_s27, %s363_s12  }
  0x27   : > { %p2971_p12 = por %p374_p11, %p373_p10  ;;  %p380_p0 = scmp.eq.s32.totalorder %s2186_s20, 3 }
  0x28   : > { %3467 = sst [smem:[#allocation28_spill]] %s2969_s28  ;;  %p2448_p1 = scmp.lt.s32.totalorder %s2789_s18, 4 }
  0x29   : > { %s3468_s24 = scalar_select %p2971_p12, 1, 0 }
  0x2a   : > { %s2979_s23 = sand.u32 1, %s2769_s30   ;;  %p2981_p2 = por %p380_p0, %p379_p13 }
  0x2b   : > { %3469 = sst [smem:[#allocation29_spill]] %s3468_s24  ;;  %s2189_s22 = sshll.u32 %s2781_s16, 4 }
  0x2c   : > { %s3470_s15 = scalar_select %p2981_p2, 1, 0 }
  0x2d   : > { %s3472_s1 = sld [smem:[#allocation32_spill]]  ;;  %s403_s0 = scalar_lea.vmem [#allocation4], %s2979_s23 }
  0x2e   : > { %3471 = sst [smem:[#allocation30_spill]] %s3470_s15  ;;  %s410_s28 = sshll.u32 %s403_s0, 4  ;;  %s411_s28 = int_to_ptr.vmem [resolvable:$true] %s410_s28 }
  0x2f   : > { %p2992_p4 = pnand %p2448_p1, %p2949_p3  ;;  %p2193_p5 = scmp.ge.s32.totalorder %s2789_s18, 1 }
  0x30   : > { %p502_p6 = scmp.lt.s32.totalorder %s2789_s18, 5  ;;  %s401_s30 = scalar_lea.sflag [#allocation5], %s2979_s23 }
  0x31   : > { %p2609_p7 = pneg %p2992_p4  ;;  %s2620_s27 = scalar_lea.vmem %s411_s28, 16 }
  0x32   : > { %p2621_p9 = scmp.ne.s32.totalorder %s411_s28, %s2620_s27  ;;  %s2791_s0 = smov [#allocation4]  }
  0x33   : > { %s408_s12 = scalar_lea.hbm %s3472_s1, %s2189_s22  ;;  %s2625_s17 = sshll.u32 %s2791_s0, 4  ;;  %s2626_s17 = int_to_ptr.vmem [resolvable:$false] %s2625_s17 }
  0x34   : > { %p2623_p10 = pnand %p2621_p9, %p2609_p7  ;;  %s2627_s13 = scalar_lea.vmem %s2626_s17, 32 }
  0x35   : > { %p2628_p3 = scmp.lt.s32.totalorder %s411_s28, %s2626_s17  ;;  %p2629_p13 = scmp.lt.s32.totalorder %s2627_s13, %s2620_s27 }
  0x36   : > { %p2624_p11 = pneg %p2623_p10 }
  0x37   : > { %p2630_p0 = por %p2629_p13, %p2628_p3 }
  0x39   : > { %p2631_p1 = pnand %p2630_p0, %p2624_p11 }
  0x3b   : > { %2634 = shalt.err (!%p2631_p1)
}
  0x3c   : > { %2440 = dma.hbm_to_vmem [thread:$0]  (!%p2992_p4), %s408_s12, 16, %s411_s28, %s401_s30  }
  0x3d   : > { %p3010_p9 = pnand %p2193_p5, %p502_p6  ;;  %s2190_s19 = sshll.u32 %s2979_s23, 4 }
  0x3e   : > { %s2248_s27 = sshll.u32 %s2781_s16, 8  ;;  %s3475_s9 = sld [smem:[#allocation35_spill]] }
  0x3f   : > { %s467_s1 = scalar_lea.vmem [#allocation7], %s2190_s19  ;;  %s464_s25 = scalar_lea.sflag [#allocation8], %s2979_s23 }
  0x40   : > { %s474_s15 = sshll.u32 %s467_s1, 4  ;;  %s2792_s30 = smov [#allocation7]   ;;  %s475_s15 = int_to_ptr.vmem [resolvable:$true] %s474_s15 }
  0x41   : > { %s2648_s24 = scalar_lea.vmem %s475_s15, 256  ;;  %s2653_s28 = sshll.u32 %s2792_s30, 4  ;;  %s2654_s28 = int_to_ptr.vmem [resolvable:$false] %s2653_s28 }
  0x42   : > { %p2649_p10 = scmp.ne.s32.totalorder %s475_s15, %s2648_s24  ;;  %s2655_s12 = scalar_lea.vmem %s2654_s28, 512 }
  0x43   : > { %p2656_p5 = scmp.lt.s32.totalorder %s475_s15, %s2654_s28  ;;  %p2657_p6 = scmp.lt.s32.totalorder %s2655_s12, %s2648_s24 }
  0x44   : > { %s473_s13 = scalar_lea.hbm %s3475_s9, %s2248_s27  ;;  %p2651_p11 = pnand %p2649_p10, %p2609_p7 }
  0x45   : > { %p2658_p13 = por %p2657_p6, %p2656_p5 }
  0x46   : > { %p2652_p3 = pneg %p2651_p11 }
  0x48   : > { %p2659_p0 = pnand %p2658_p13, %p2652_p3 }
  0x4a   : > { %2662 = shalt.err (!%p2659_p0)
}
  0x4b   : > { %s2793_s27 = smov 64   ;;  %s2794_s1 = smov 4  }
  0x4c   : > { %2443 = dma.hbm_to_vmem [thread:$0]  (!%p2992_p4), %s473_s13, 256, %s475_s15, %s464_s25, %s2793_s27, %s2793_s27, %s2794_s1  }
  0x4d   : > { %506 = sbr.rel (%p3010_p9) target bundleno = 1876 (0x754), region = 68  ;;  %s3028_s23 = sand.u32 (!%p3010_p9), 1, %s2765_s29  }
  0x4e   : > { %s509_s19 = scalar_lea.sflag (!%p3010_p9), [#allocation5], %s3028_s23 }
  0x52   : > { %2734 = dma.done.wait (%p2959_p8), %s509_s19, 16  }
  0x53   : > { %2736 = vsyncadd (%p2959_p8), %s509_s19, 4294967280  ;;  %s2194_s25 = sshll.u32 %s3028_s23, 4  ;;  %s517_s24 = scalar_lea.sflag [#allocation8], %s3028_s23 }
  0x54   : > { %s3038_s15 = scalar_lea.vmem [#allocation7], %s2194_s25 }
  0x55   : > { %2738 = dma.done.wait (%p2959_p8), %s517_s24, 256  }
  0x56   : > { %2740 = vsyncadd (%p2959_p8), %s517_s24, 4294967040  ;;  %s3440_s20 = sand.u32 1, %s2753_s26   ;;  %p601_p4 = scmp.lt.s32.totalorder %s2773_s14, 1 }
  0x57   : > { %s2195_s22 = sshll.u32 %s3440_s20, 4  ;;  %s3476_s3 = sld [smem:[#allocation33_spill]] }
  0x58   : > { %s3049_s17 = scalar_select %p601_p4, %s2773_s14, 1 }
  0x59   : > { %s3477_s5 = sld [smem:[#allocation34_spill]]  ;;  %s3094_s29 = scalar_lea.vmem [#allocation9], %s2195_s22 }
  0x5a   : > { %s2249_s28 = sshll.u32 %s3049_s17, 4  ;;  %s622_s18 = scalar_lea.vmem %s3423_s7, %s3049_s17 }
  0x5b   : > { %s625_s27 = scalar_lea.vmem %s3424_s8, %s3049_s17  ;;  %s2251_s24 = sshll.u32 %s3049_s17, 5 }
  0x5c   : > { %s3088_s13 = scalar_lea.vmem %s3427_s11, %s2251_s24  ;;  %s3478_s16 = sld [smem:[#allocation36_spill]] }
  0x5d   : > { %s608_s1 = scalar_lea.vmem %s3476_s3, %s2249_s28  ;;  %p2202_p8 = scmp.ne.s32.totalorder %s2773_s14, 0 }
  0x5e   : > { %s3479_s26 = sld [smem:[#allocation21_spill]] (!%p2202_p8) }
  0x5f   : > { %s3066_s30 = scalar_lea.vmem %s3477_s5, %s2249_s28  ;;  %642 = sbr.rel (%p2202_p8) target bundleno = 113 (0x71), region = 80 }
  0x62   : > { %s636_s5 = scalar_lea.vmem %s3478_s16, %s3049_s17 }
  0x64   : > { %s2203_s21 = sshll.u32 %s3479_s26, 4 }
  0x65   : > { %s3480_s19 = sld [smem:[#allocation31_spill]] }
  0x6b   : > { %s644_s25 = scalar_lea.vmem %s3480_s19, %s2203_s21 }
  0x6c   : > { %v678_v0 = vld [vmem:[%s644_s25] sm:$0xff]  ;;  %v680_v1 = vld [vmem:[%s644_s25 + $0x8] sm:$0xff] }
  0x6d   : > { %679 = vst [vmem:[#allocation2] sm:$0xff] %v678_v0  ;;  %681 = vst [vmem:[#allocation2 + $0x8] sm:$0xff] %v680_v1 }
  0x6e   : > { %689 = vsyncadd [#allocation10], 256 }
  0x6f   : > { %2741 = dma.done.wait [#allocation10], 256 }
  0x70   : > { %2742 = vsyncadd [#allocation10], 4294967040 }
  0x71 PF: > { %v2557_v2 = vld [vmem:[%s608_s1 + $0x8] sm:$0xff]   ;;  %v2795_v3 = vmov 0.0   ;;  %v2558_v4 = vld [vmem:[%s608_s1] sm:$0xff]   ;;  %vm2796_vm0 = vmmov 0   ;;  %s3481_s16 = scalar_lea.vmem [#allocation4], %s3028_s23  ;;  %s3482_s24 = scalar_lea.vmem %s3418_s2, %s3049_s17  ;;  %vm739_vm1 = vcmask 261120  }
  0x72   : > { %2299 = vmatprep.subr.bf16.mxu0 %v2795_v3  ;;  %2307 = vmatprep.subr.bf16.mxu1 %v2795_v3  ;;  %v2204_v7 = vld [vmem:[%s3481_s16] ss:$0 sm:$0xff]  ;;  %s3483_s20 = scalar_lea.vmem %s3420_s4, %s3049_s17  ;;  %s2797_s28 = smov 120   ;;  %vm788_vm2 = vcmask 64512   ;;  %vm851_vm3 = vcmask 1043456   ;;  %vm1011_vm4 = vcmask 130112  }
  0x73   : > { %2300 = vmatpush3.bf16.msra.mxu0 %v2557_v2  ;;  %2303 = vmatprep.mubr.msk.bf16.mxu0 %vm2796_vm0, %v2795_v3  ;;  %v2205_v10 = vld [vmem:[%s3482_s24] ss:$0 sm:$0xff]  ;;  %s2798_s9 = smov 96   ;;  %s2799_s0 = smov 80   ;;  %vm1127_vm5 = vcmask 195712   ;;  %vm1243_vm6 = vcmask 261312  }
  0x74   : > { %v3105_v5 = vld [vmem:[#allocation2] sm:$0xff]  ;;  %v3107_v6 = vld [vmem:[#allocation2 + $0x8] sm:$0xff]  ;;  %2301 = vmatprep.subr.bf16.mxu0 %v2795_v3  ;;  %2309 = vmatprep.mubr.msk.bf16.mxu1 %vm2796_vm0, %v2795_v3  ;;  %s2800_s26 = smov 88   ;;  %s2801_s21 = smov 72   ;;  %vm1903_vm7 = vcmask 523264  }
  0x75   : > { %v703_v8 = vmul.f32 %v2204_v7, %v3105_v5  ;;  %v704_v9 = vmul.f32 %v2204_v7, %v3107_v6  ;;  %v2206_v16 = vld [vmem:[%s3483_s20] ss:$0 sm:$0xff]  ;;  %s2802_s12 = smov 112   ;;  %s2803_s3 = smov 104  }
  0x76   : > { %s2804_s19 = smov 56   ;;  %s2805_s16 = smov 64  }
  0x77   : > { %2302 = vmatpush3.bf16.msra.mxu0 %v2558_v4  ;;  %2567 = vtanh.f32 %v703_v8  ;;  %s2806_s22 = smov 48   ;;  %s2807_s1 = smov 40  }
  0x78   : > { %2569 = vtanh.f32 %v704_v9  ;;  %2313 = vmatprep.subr.bf16.mxu0 %v2795_v3  ;;  %s2808_s24 = smov 8   ;;  %s2809_s23 = smov 16  }
  0x79   : > { %s2810_s25 = smov 24   ;;  %p2242_p7 = scmp.ne.s32.totalorder %s2773_s14, 1 }
  0x84   : > { %v2568_v11 = vpop.eup %2567 }
  0x85   : > { %v2570_v12 = vpop.eup %2569  ;;  %v713_v13 = vmul.f32 %v2568_v11, %v2205_v10 }
  0x86   : > { %v714_v14 = vmul.f32 %v2570_v12, %v2205_v10 }
  0x88   : > { %v715_v15 = vpack.c.bf16 %v714_v14, %v713_v13 }
  0x8a   : > { %2304 = vmatmul.mubr.msk.bf16.vlgmr.msra.gmra.mxu0 %vm739_vm1, %v715_v15 }
  0x8b   : > { %2315 = vmatprep.mubr.msk.bf16.mxu0 %vm2796_vm0, %v2795_v3 }
 0x14a   : > { %v777_v17 = vpop.f32.mrf.mxu0 }
 0x14b   : > { %v778_v18 = vadd.f32 %v2206_v16, %v777_v17 }
 0x14c   : > { %v2305_v19 = vpop.f32.mrf.mxu0 }
 0x14d   : > { %v3130_v20 = vpack.c.bf16 %v778_v18, %v778_v18 }
 0x14e   : > { %v780_v21 = vpop.f32.mrf.mxu0 }
 0x14f   : > { %897 = vrot.lane.b32.xlu1 %v3130_v20, %s2797_s28  ;;  %786 = vrot.lane.b32.xlu0 %v3130_v20, %s2798_s9  ;;  %v781_v23 = vadd.f32 %v2206_v16, %v780_v21 }
 0x150   : > { %v2306_v22 = vpop.f32.mrf.mxu0 }
 0x151   : > { %v3138_v24 = vpack.c.bf16 %v781_v23, %v781_v23 }
 0x153   : > { %1015 = vrot.lane.b32.xlu1 %v3130_v20, %s2799_s0  ;;  %899 = vrot.lane.b32.xlu0 %v3130_v20, %s2800_s26 }
 0x157   : > { %1131 = vrot.lane.b32.xlu1 %v3130_v20, %s2801_s21  ;;  %1013 = vrot.lane.b32.xlu0 %v3130_v20, %s2802_s12 }
 0x15b   : > { %1129 = vrot.lane.b32.xlu0 %v3130_v20, %s2803_s3  ;;  %1247 = vrot.lane.b32.xlu1 %v3138_v24, %s2798_s9 }
 0x15f   : > { %1358 = vrot.lane.b32.xlu0 %v3138_v24, %s2800_s26  ;;  %1356 = vrot.lane.b32.xlu1 %v3138_v24, %s2797_s28  ;;  %s3484_s28 = scalar_lea.vmem %s3422_s6, %s3049_s17 }
 0x163   : > { %1473 = vrot.lane.b32.xlu0 %v3138_v24, %s2799_s0  ;;  %1471 = vrot.lane.b32.xlu1 %v3138_v24, %s2802_s12 }
 0x167   : > { %1588 = vrot.lane.b32.xlu0 %v3138_v24, %s2801_s21  ;;  %1586 = vrot.lane.b32.xlu1 %v3138_v24, %s2803_s3 }
 0x16b   : > { %958 = vrot.lane.b32.xlu0 %v3130_v20, %s2804_s19  ;;  %846 = vrot.lane.b32.xlu1 %v3130_v20, %s2805_s16 }
 0x1c1   : > { %v898_v25 = vpop.permute.xlu1 %897  ;;  %v787_v26 = vpop.permute.xlu0 %786 }
 0x1c2   : > { %v793_v27 = vsel %vm788_vm2, %v787_v26, 0 }
 0x1c3   : > { %2308 = vmatpush3.bf16.xpose.msra.mxu1 %v793_v27 }
 0x1c4   : > { %2319 = vmatprep.subr.bf16.mxu1 %v2795_v3 }
 0x1c5   : > { %v1016_v28 = vpop.permute.xlu1 %1015  ;;  %v900_v29 = vpop.permute.xlu0 %899 }
 0x1c6   : > { %v905_v31 = vsel %vm788_vm2, %v900_v29, 0  ;;  %v1021_v34 = vsel %vm788_vm2, %v1016_v28, 0 }
 0x1c9   : > { %v1132_v30 = vpop.permute.xlu1 %1131  ;;  %v1014_v36 = vpop.permute.xlu0 %1013 }
 0x1ca   : > { %2310 = vmatmul.mubr.msk.bf16.vlgmr.msra.gmra.mxu1 %vm788_vm2, %v3130_v20  ;;  %v1137_v38 = vsel %vm788_vm2, %v1132_v30, 0 }
 0x1cb   : > { %2320 = vmatpush3.bf16.xpose.msra.mxu1 %v905_v31  ;;  %2321 = vmatprep.mubr.msk.bf16.mxu1 %vm2796_vm0, %v2795_v3 }
 0x1cc   : > { %2331 = vmatprep.subr.bf16.mxu1 %v2795_v3 }
 0x1cd   : > { %v1248_v32 = vpop.permute.xlu1 %1247  ;;  %v1130_v41 = vpop.permute.xlu0 %1129 }
 0x1ce   : > { %v1253_v42 = vsel %vm788_vm2, %v1248_v32, 0 }
 0x1d1   : > { %v1357_v33 = vpop.permute.xlu1 %1356  ;;  %v1359_v43 = vpop.permute.xlu0 %1358 }
 0x1d2   : > { %2322 = vmatmul.mubr.msk.bf16.vlgmr.msra.gmra.mxu1 %vm788_vm2, %v898_v25  ;;  %v1364_v44 = vsel %vm788_vm2, %v1359_v43, 0 }
 0x1d3   : > { %2332 = vmatpush3.bf16.xpose.msra.mxu1 %v1021_v34  ;;  %2333 = vmatprep.mubr.msk.bf16.mxu1 %vm2796_vm0, %v2795_v3 }
 0x1d4   : > { %2343 = vmatprep.subr.bf16.mxu1 %v2795_v3 }
 0x1d5   : > { %v1472_v35 = vpop.permute.xlu1 %1471  ;;  %v1474_v45 = vpop.permute.xlu0 %1473 }
 0x1d6   : > { %v1479_v46 = vsel %vm788_vm2, %v1474_v45, 0 }
 0x1d9   : > { %v1587_v37 = vpop.permute.xlu1 %1586  ;;  %v1589_v47 = vpop.permute.xlu0 %1588 }
 0x1da   : > { %2334 = vmatmul.mubr.msk.bf16.vlgmr.msra.gmra.mxu1 %vm788_vm2, %v1014_v36  ;;  %v1594_v48 = vsel %vm788_vm2, %v1589_v47, 0 }
 0x1db   : > { %2344 = vmatpush3.bf16.xpose.msra.mxu1 %v1137_v38  ;;  %2345 = vmatprep.mubr.msk.bf16.mxu1 %vm2796_vm0, %v2795_v3 }
 0x1dc   : > { %2355 = vmatprep.subr.bf16.mxu1 %v2795_v3 }
 0x1dd   : > { %v847_v39 = vpop.permute.xlu1 %846  ;;  %v959_v29 = vpop.permute.xlu0 %958 }
 0x1de   : > { %v853_v40 = vsel %vm851_vm3, %v847_v39, 0  ;;  %v964_v38 = vsel %vm851_vm3, %v959_v29, 0 }
 0x1df   : > { %2314 = vmatpush3.bf16.msra.mxu0 %v853_v40 }
 0x1e0   : > { %2325 = vmatprep.subr.bf16.mxu0 %v2795_v3 }
 0x1e2   : > { %2346 = vmatmul.mubr.msk.bf16.vlgmr.msra.gmra.mxu1 %vm788_vm2, %v1130_v41 }
 0x1e3   : > { %2356 = vmatpush3.bf16.xpose.msra.mxu1 %v1253_v42  ;;  %2357 = vmatprep.mubr.msk.bf16.mxu1 %vm2796_vm0, %v2795_v3 }
 0x1e4   : > { %2367 = vmatprep.subr.bf16.mxu1 %v2795_v3 }
 0x1ea   : > { %2358 = vmatmul.mubr.msk.bf16.vlgmr.msra.gmra.mxu1 %vm788_vm2, %v3138_v24 }
 0x1eb   : > { %2368 = vmatpush3.bf16.xpose.msra.mxu1 %v1364_v44  ;;  %2369 = vmatprep.mubr.msk.bf16.mxu1 %vm2796_vm0, %v2795_v3 }
 0x1ec   : > { %2379 = vmatprep.subr.bf16.mxu1 %v2795_v3 }
 0x1f2   : > { %2370 = vmatmul.mubr.msk.bf16.vlgmr.msra.gmra.mxu1 %vm788_vm2, %v1357_v33 }
 0x1f3   : > { %2380 = vmatpush3.bf16.xpose.msra.mxu1 %v1479_v46  ;;  %2381 = vmatprep.mubr.msk.bf16.mxu1 %vm2796_vm0, %v2795_v3 }
 0x1f4   : > { %2391 = vmatprep.subr.bf16.mxu1 %v2795_v3 }
 0x1fa   : > { %2382 = vmatmul.mubr.msk.bf16.vlgmr.msra.gmra.mxu1 %vm788_vm2, %v1472_v35 }
 0x1fb   : > { %2392 = vmatpush3.bf16.xpose.msra.mxu1 %v1594_v48  ;;  %2393 = vmatprep.mubr.msk.bf16.mxu1 %vm2796_vm0, %v2795_v3 }
 0x1fc   : > { %2403 = vmatprep.subr.bf16.mxu1 %v2795_v3 }
 0x202   : > { %2394 = vmatmul.mubr.msk.bf16.vlgmr.msra.gmra.mxu1 %vm788_vm2, %v1587_v37 }
 0x203   : > { %2407 = vmatprep.mubr.msk.bf16.mxu1 %vm2796_vm0, %v2795_v3 }
 0x28a   : > { %v829_v49 = vpop.f32.mrf.mxu1 }
 0x28b   : > { %v835_v50 = vsel %vm788_vm2, %v829_v49, -inf }
 0x28c   : > { %v2311_v51 = vpop.f32.mrf.mxu1  ;;  %836 = vmax.xlane.f32.xlu0 %v835_v50 }
 0x28e   : > { %v832_v52 = vpop.f32.mrf.mxu1 }
 0x290   : > { %v2312_v53 = vpop.f32.mrf.mxu1 }
 0x292   : > { %v941_v54 = vpop.f32.mrf.mxu1 }
 0x293   : > { %v947_v55 = vsel %vm788_vm2, %v941_v54, -inf }
 0x294   : > { %v2323_v56 = vpop.f32.mrf.mxu1  ;;  %948 = vmax.xlane.f32.xlu1 %v947_v55 }
 0x296   : > { %v944_v57 = vpop.f32.mrf.mxu1 }
 0x298   : > { %v2324_v58 = vpop.f32.mrf.mxu1 }
 0x29a   : > { %v3198_v59 = vpop.f32.mrf.mxu1 }
 0x29b   : > { %v1063_v18 = vsel %vm788_vm2, %v3198_v59, -inf }
 0x29c   : > { %v2335_v60 = vpop.f32.mrf.mxu1 }
 0x29e   : > { %v1060_v61 = vpop.f32.mrf.mxu1 }
 0x2a0   : > { %v2336_v62 = vpop.f32.mrf.mxu1 }
 0x2a2   : > { %v3200_v63 = vpop.f32.mrf.mxu1  ;;  %1074 = vrot.lane.b32.xlu0 %v3130_v20, %s2806_s22 }
 0x2a3   : > { %v1179_v21 = vsel %vm788_vm2, %v3200_v63, -inf }
 0x2a4   : > { %v2347_v0 = vpop.f32.mrf.mxu1 }
 0x2a5   : > { %1190 = vrot.lane.b32.xlu1 %v3130_v20, %s2807_s1 }
 0x2a6   : > { %v1176_v1 = vpop.f32.mrf.mxu1 }
 0x2a8   : > { %v2348_v2 = vpop.f32.mrf.mxu1 }
 0x2aa   : > { %v3206_v4 = vpop.f32.mrf.mxu1 }
 0x2ab   : > { %v1295_v25 = vsel %vm788_vm2, %v3206_v4, -inf }
 0x2ac   : > { %v2359_v7 = vpop.f32.mrf.mxu1 }
 0x2ae   : > { %v1292_v8 = vpop.f32.mrf.mxu1 }
 0x2b0   : > { %v2360_v9 = vpop.f32.mrf.mxu1 }
 0x2b2   : > { %v3208_v10 = vpop.f32.mrf.mxu1 }
 0x2b3   : > { %v1406_v26 = vsel %vm788_vm2, %v3208_v10, -inf }
 0x2b4   : > { %v2371_v11 = vpop.f32.mrf.mxu1 }
 0x2b6   : > { %v1403_v12 = vpop.f32.mrf.mxu1 }
 0x2b8   : > { %v2372_v13 = vpop.f32.mrf.mxu1 }
 0x2ba   : > { %v3210_v14 = vpop.f32.mrf.mxu1 }
 0x2bb   : > { %v1521_v27 = vsel %vm788_vm2, %v3210_v14, -inf }
 0x2bc   : > { %v2383_v15 = vpop.f32.mrf.mxu1 }
 0x2be   : > { %v1518_v16 = vpop.f32.mrf.mxu1 }
 0x2c0   : > { %v2384_v17 = vpop.f32.mrf.mxu1 }
 0x2c1   : > { %1064 = vmax.xlane.f32.xlu0 %v1063_v18 }
 0x2c2   : > { %v3214_v19 = vpop.f32.mrf.mxu1 }
 0x2c3   : > { %v1636_v28 = vsel %vm788_vm2, %v3214_v19, -inf }
 0x2c4   : > { %v2395_v20 = vpop.f32.mrf.mxu1 }
 0x2c5   : > { %1180 = vmax.xlane.f32.xlu0 %v1179_v21 }
 0x2c6   : > { %v1633_v22 = vpop.f32.mrf.mxu1 }
 0x2c8   : > { %v2396_v23 = vpop.f32.mrf.mxu1 }
 0x2c9   : > { %1296 = vmax.xlane.f32.xlu0 %v1295_v25  ;;  %1407 = vmax.xlane.f32.xlu1 %v1406_v26 }
 0x2cd   : > { %1522 = vmax.xlane.f32.xlu0 %v1521_v27 }
 0x2d1   : > { %1637 = vmax.xlane.f32.xlu0 %v1636_v28 }
 0x2da   : > { %1417 = vrot.lane.b32.xlu1 %v3138_v24, %s2804_s19 }
 0x2de   : > { %1532 = vrot.lane.b32.xlu1 %v3138_v24, %s2806_s22 }
 0x2e2   : > { %1647 = vrot.lane.b32.xlu1 %v3138_v24, %s2807_s1 }
 0x2e7   : > { %1306 = vrot.lane.b32.xlu0 %v3138_v24, %s2805_s16 }
 0x315   : > { %v837_v30 = vpop.xlane.xlu0 %836 }
 0x316   : > { %v838_v31 = vsub.f32 %v829_v49, %v837_v30 }
 0x318   : > { %v839_v32 = vmul.f32 1.442695, %v838_v31 }
 0x319   : > { %v1075_v39 = vpop.permute.xlu0 %1074 }
 0x31a   : > { %2571 = vpow2.f32 %v839_v32  ;;  %v1080_v42 = vsel %vm851_vm3, %v1075_v39, 0 }
 0x31d   : > { %v949_v33 = vpop.xlane.xlu1 %948 }
 0x31e   : > { %v950_v34 = vsub.f32 %v941_v54, %v949_v33 }
 0x320   : > { %v951_v35 = vmul.f32 1.442695, %v950_v34 }
 0x321   : > { %v1191_v46 = vpop.permute.xlu1 %1190 }
 0x322   : > { %2573 = vpow2.f32 %v951_v35  ;;  %v1196_v1 = vsel %vm851_vm3, %v1191_v46, 0 }
 0x327   : > { %v2572_v36 = vpop.eup %2571 }
 0x328   : > { %v845_v37 = vpack.c.bf16 %v2572_v36, %v2572_v36  ;;  %v841_v9 = vsel %vm788_vm2, %v2572_v36, 0.0 }
 0x32a   : > { %2316 = vmatmul.mubr.msk.bf16.vlgmr.msra.gmra.mxu0 %vm788_vm2, %v845_v37 }
 0x32b   : > { %2326 = vmatpush3.bf16.msra.mxu0 %v964_v38  ;;  %2327 = vmatprep.mubr.msk.bf16.mxu0 %vm2796_vm0, %v2795_v3 }
 0x32c   : > { %2337 = vmatprep.subr.bf16.mxu0 %v2795_v3 }
 0x32f   : > { %v2574_v24 = vpop.eup %2573 }
 0x330   : > { %v953_v40 = vsel %vm788_vm2, %v2574_v24, 0.0  ;;  %v957_v41 = vpack.c.bf16 %v2574_v24, %v2574_v24 }
 0x331   : > { %954 = vadd.xlane.f32.xlu1 %v953_v40 }
 0x332   : > { %2328 = vmatmul.mubr.msk.bf16.vlgmr.msra.gmra.mxu0 %vm788_vm2, %v957_v41 }
 0x333   : > { %2338 = vmatpush3.bf16.msra.mxu0 %v1080_v42  ;;  %2339 = vmatprep.mubr.msk.bf16.mxu0 %vm2796_vm0, %v2795_v3 }
 0x334   : > { %2349 = vmatprep.subr.bf16.mxu0 %v2795_v3 }
 0x34a   : > { %v1065_v43 = vpop.xlane.xlu0 %1064 }
 0x34b   : > { %v1066_v44 = vsub.f32 %v3198_v59, %v1065_v43 }
 0x34d   : > { %v1067_v45 = vmul.f32 1.442695, %v1066_v44 }
 0x34e   : > { %v1181_v47 = vpop.xlane.xlu0 %1180 }
 0x34f   : > { %2575 = vpow2.f32 %v1067_v45  ;;  %v1182_v48 = vsub.f32 %v3200_v63, %v1181_v47 }
 0x351   : > { %v1183_v49 = vmul.f32 1.442695, %v1182_v48 }
 0x352   : > { %v1297_v50 = vpop.xlane.xlu0 %1296  ;;  %v1408_v51 = vpop.xlane.xlu1 %1407 }
 0x353   : > { %2577 = vpow2.f32 %v1183_v49  ;;  %v1409_v52 = vsub.f32 %v3208_v10, %v1408_v51  ;;  %v1298_v53 = vsub.f32 %v3206_v4, %v1297_v50 }
 0x355   : > { %v1410_v54 = vmul.f32 1.442695, %v1409_v52  ;;  %v1299_v57 = vmul.f32 1.442695, %v1298_v53 }
 0x356   : > { %v1523_v55 = vpop.xlane.xlu0 %1522  ;;  %v1418_v17 = vpop.permute.xlu1 %1417 }
 0x357   : > { %v1524_v56 = vsub.f32 %v3210_v14, %v1523_v55  ;;  %2579 = vpow2.f32 %v1410_v54  ;;  %v1423_v20 = vsel %vm851_vm3, %v1418_v17, 0 }
 0x359   : > { %v1525_v58 = vmul.f32 1.442695, %v1524_v56 }
 0x35a   : > { %v1638_v59 = vpop.xlane.xlu0 %1637  ;;  %v1533_v22 = vpop.permute.xlu1 %1532 }
 0x35b   : > { %2581 = vpow2.f32 %v1525_v58  ;;  %v1639_v60 = vsub.f32 %v3214_v19, %v1638_v59  ;;  %v1538_v25 = vsel %vm851_vm3, %v1533_v22, 0 }
 0x35c   : > { %v2576_v61 = vpop.eup %2575  ;;  %2583 = vpow2.f32 %v1299_v57 }
 0x35d   : > { %v1640_v62 = vmul.f32 1.442695, %v1639_v60  ;;  %v1069_v63 = vsel %vm788_vm2, %v2576_v61, 0.0  ;;  %v1073_v0 = vpack.c.bf16 %v2576_v61, %v2576_v61 }
 0x35e   : > { %1070 = vadd.xlane.f32.xlu1 %v1069_v63  ;;  %v1307_v7 = vpop.permute.xlu0 %1306  ;;  %v1648_v26 = vpop.permute.xlu1 %1647 }
 0x35f   : > { %2585 = vpow2.f32 %v1640_v62  ;;  %2340 = vmatmul.mubr.msk.bf16.vlgmr.msra.gmra.mxu0 %vm788_vm2, %v1073_v0  ;;  %v1312_v12 = vsel %vm851_vm3, %v1307_v7, 0  ;;  %v1653_v28 = vsel %vm851_vm3, %v1648_v26, 0 }
 0x360   : > { %v2578_v2 = vpop.eup %2577  ;;  %2350 = vmatpush3.bf16.msra.mxu0 %v1196_v1  ;;  %2351 = vmatprep.mubr.msk.bf16.mxu0 %vm2796_vm0, %v2795_v3 }
 0x361   : > { %v1185_v4 = vsel %vm788_vm2, %v2578_v2, 0.0  ;;  %2361 = vmatprep.subr.bf16.mxu0 %v2795_v3  ;;  %v1189_v10 = vpack.c.bf16 %v2578_v2, %v2578_v2 }
 0x362   : > { %1186 = vadd.xlane.f32.xlu1 %v1185_v4 }
 0x364   : > { %v2580_v8 = vpop.eup %2579 }
 0x365   : > { %v1412_v11 = vsel %vm788_vm2, %v2580_v8, 0.0  ;;  %v1416_v23 = vpack.c.bf16 %v2580_v8, %v2580_v8 }
 0x366   : > { %842 = vadd.xlane.f32.xlu1 %v841_v9  ;;  %1413 = vadd.xlane.f32.xlu0 %v1412_v11 }
 0x367   : > { %2352 = vmatmul.mubr.msk.bf16.vlgmr.msra.gmra.mxu0 %vm788_vm2, %v1189_v10 }
 0x368   : > { %v2582_v13 = vpop.eup %2581  ;;  %2362 = vmatpush3.bf16.msra.mxu0 %v1312_v12  ;;  %2363 = vmatprep.mubr.msk.bf16.mxu0 %vm2796_vm0, %v2795_v3  ;;  %v2559_v12 = vld [vmem:[%s3066_s30 + $0x8] sm:$0xff]  }
 0x369   : > { %v1527_v14 = vsel %vm788_vm2, %v2582_v13, 0.0  ;;  %2373 = vmatprep.subr.bf16.mxu0 %v2795_v3  ;;  %v2584_v15 = vpop.eup %2583  ;;  %v1531_v27 = vpack.c.bf16 %v2582_v13, %v2582_v13  ;;  %2404 = vmatpush3.bf16.msra.mxu1 %v2559_v12 }
 0x36a   : > { %1528 = vadd.xlane.f32.xlu0 %v1527_v14  ;;  %v1305_v19 = vpack.c.bf16 %v2584_v15, %v2584_v15  ;;  %v1301_v21 = vsel %vm788_vm2, %v2584_v15, 0.0  ;;  %v2560_v15 = vld [vmem:[%s3066_s30] sm:$0xff]   ;;  %2405 = vmatprep.subr.bf16.mxu1 %v2795_v3 }
 0x36c   : > { %v2586_v16 = vpop.eup %2585 }
 0x36d   : > { %v1642_v18 = vsel %vm788_vm2, %v2586_v16, 0.0  ;;  %v1646_v29 = vpack.c.bf16 %v2586_v16, %v2586_v16  ;;  %2406 = vmatpush3.bf16.msra.mxu1 %v2560_v15 }
 0x36e   : > { %1643 = vadd.xlane.f32.xlu0 %v1642_v18  ;;  %2419 = vmatprep.subr.bf16.mxu1 %v2795_v3 }
 0x36f   : > { %2364 = vmatmul.mubr.msk.bf16.vlgmr.msra.gmra.mxu0 %vm788_vm2, %v1305_v19 }
 0x370   : > { %2374 = vmatpush3.bf16.msra.mxu0 %v1423_v20  ;;  %2375 = vmatprep.mubr.msk.bf16.mxu0 %vm2796_vm0, %v2795_v3 }
 0x371   : > { %2385 = vmatprep.subr.bf16.mxu0 %v2795_v3 }
 0x372   : > { %1302 = vadd.xlane.f32.xlu0 %v1301_v21 }
 0x377   : > { %2376 = vmatmul.mubr.msk.bf16.vlgmr.msra.gmra.mxu0 %vm788_vm2, %v1416_v23 }
 0x378   : > { %2386 = vmatpush3.bf16.msra.mxu0 %v1538_v25  ;;  %2387 = vmatprep.mubr.msk.bf16.mxu0 %vm2796_vm0, %v2795_v3 }
 0x379   : > { %2397 = vmatprep.subr.bf16.mxu0 %v2795_v3 }
 0x37f   : > { %2388 = vmatmul.mubr.msk.bf16.vlgmr.msra.gmra.mxu0 %vm788_vm2, %v1531_v27 }
 0x380   : > { %2398 = vmatpush3.bf16.msra.mxu0 %v1653_v28  ;;  %2399 = vmatprep.mubr.msk.bf16.mxu0 %vm2796_vm0, %v2795_v3 }
 0x381   : > { %2411 = vmatprep.subr.bf16.mxu0 %v2795_v3 }
 0x387   : > { %2400 = vmatmul.mubr.msk.bf16.vlgmr.msra.gmra.mxu0 %vm788_vm2, %v1646_v29 }
 0x388   : > { %2415 = vmatprep.mubr.msk.bf16.mxu0 %vm2796_vm0, %v2795_v3 }
 0x3ba   : > { %v955_v30 = vpop.xlane.xlu1 %954 }
 0x3bb   : > { %2587 = vrcp.f32 %v955_v30 }
 0x3c8   : > { %v2588_v38 = vpop.eup %2587 }
 0x3e7   : > { %v1071_v31 = vpop.xlane.xlu1 %1070 }
 0x3ea   : > { %v889_v32 = vpop.f32.mrf.mxu0 }
 0x3eb   : > { %v1187_v33 = vpop.xlane.xlu1 %1186 }
 0x3ec   : > { %v2317_v34 = vpop.f32.mrf.mxu0 }
 0x3ee   : > { %v892_v35 = vpop.f32.mrf.mxu0 }
 0x3ef   : > { %v843_v36 = vpop.xlane.xlu1 %842  ;;  %v1414_v45 = vpop.xlane.xlu0 %1413 }
 0x3f0   : > { %2589 = vrcp.f32 %v843_v36  ;;  %v2318_v37 = vpop.f32.mrf.mxu0  ;;  %v2561_v36 = vld [vmem:[%s3038_s15 + $0x8] sm:$0xff]  }
 0x3f1   : > { %2591 = vrcp.f32 %v1071_v31  ;;  %2412 = vmatpush3.bf16.msra.mxu0 %v2561_v36  ;;  %v2562_v37 = vld [vmem:[%s3038_s15] sm:$0xff]  }
 0x3f2   : > { %v1000_v24 = vpop.f32.mrf.mxu0  ;;  %2413 = vmatprep.subr.bf16.mxu0 %v2795_v3 }
 0x3f3   : > { %v1006_v39 = vmul.f32 %v2588_v38, %v1000_v24  ;;  %v1529_v46 = vpop.xlane.xlu0 %1528  ;;  %v2563_v38 = vld [vmem:[%s3088_s13 + $0x18] sm:$0xff]   ;;  %v2226_v24 = vld [vmem:[%s3484_s28] ss:$0 sm:$0xff] }
 0x3f4   : > { %v2329_v40 = vpop.f32.mrf.mxu0 }
 0x3f5   : > { %1008 = vrot.lane.b32.xlu1 %v1006_v39, %s2808_s24  ;;  %2414 = vmatpush3.bf16.msra.mxu0 %v2562_v37 }
 0x3f6   : > { %v1003_v41 = vpop.f32.mrf.mxu0 }
 0x3f7   : > { %v1644_v47 = vpop.xlane.xlu0 %1643  ;;  %v2230_v41 = vld [vmem:[%s622_s18] ss:$0 sm:$0xff] }
 0x3f8   : > { %v2330_v42 = vpop.f32.mrf.mxu0 }
 0x3fb   : > { %v1303_v49 = vpop.xlane.xlu0 %1302 }
 0x3fc   : > { %2593 = vrcp.f32 %v1303_v49 }
 0x3fd   : > { %v2590_v43 = vpop.eup %2589  ;;  %2595 = vrcp.f32 %v1414_v45 }
 0x3fe   : > { %v895_v44 = vmul.f32 %v2590_v43, %v889_v32  ;;  %v2592_v48 = vpop.eup %2591  ;;  %2597 = vrcp.f32 %v1187_v33 }
 0x3ff   : > { %2599 = vrcp.f32 %v1529_v46 }
 0x400   : > { %896 = vst.msk [vmem:[#allocation3] sm:$0xff] %vm788_vm2, %v895_v44  ;;  %2601 = vrcp.f32 %v1644_v47 }
 0x409   : > { %v2594_v59 = vpop.eup %2593 }
 0x40a   : > { %v2596_v1 = vpop.eup %2595 }
 0x40b   : > { %v2598_v8 = vpop.eup %2597 }
 0x40c   : > { %v2600_v13 = vpop.eup %2599 }
 0x40d   : > { %v2602_v20 = vpop.eup %2601 }
 0x41f   : > { %v1116_v50 = vpop.f32.mrf.mxu0 }
 0x420   : > { %v1122_v51 = vmul.f32 %v2592_v48, %v1116_v50 }
 0x421   : > { %v2341_v52 = vpop.f32.mrf.mxu0 }
 0x422   : > { %1124 = vrot.lane.b32.xlu1 %v1122_v51, %s2809_s23  ;;  %v2231_v51 = vld [vmem:[%s625_s27] ss:$0 sm:$0xff]  ;;  %s3485_s27 = scalar_lea.vmem %s3426_s10, %s3049_s17 }
 0x423   : > { %v1119_v53 = vpop.f32.mrf.mxu0 }
 0x425   : > { %v2342_v54 = vpop.f32.mrf.mxu0 }
 0x427   : > { %v1232_v55 = vpop.f32.mrf.mxu0 }
 0x428   : > { %v1238_v10 = vmul.f32 %v2598_v8, %v1232_v55  ;;  %v2564_v55 = vld [vmem:[%s3088_s13 + $0x10] sm:$0xff]  }
 0x429   : > { %v2353_v56 = vpop.f32.mrf.mxu0 }
 0x42a   : > { %v2566_v56 = vld [vmem:[%s3088_s13] sm:$0xff]  }
 0x42b   : > { %v1235_v57 = vpop.f32.mrf.mxu0 }
 0x42c   : > { %v2232_v57 = vld [vmem:[%s3485_s27] ss:$0 sm:$0xff] }
 0x42d   : > { %v2354_v58 = vpop.f32.mrf.mxu0 }
 0x42f   : > { %v1348_v60 = vpop.f32.mrf.mxu0 }
 0x430   : > { %v1354_v61 = vmul.f32 %v2594_v59, %v1348_v60 }
 0x431   : > { %v2365_v62 = vpop.f32.mrf.mxu0 }
 0x432   : > { %1355 = vst.msk [vmem:[#allocation3 + $0x8] sm:$0xff] %vm788_vm2, %v1354_v61 }
 0x433   : > { %v1351_v63 = vpop.f32.mrf.mxu0 }
 0x435   : > { %v2366_v0 = vpop.f32.mrf.mxu0 }
 0x437   : > { %v1459_v2 = vpop.f32.mrf.mxu0 }
 0x438   : > { %v1465_v4 = vmul.f32 %v2596_v1, %v1459_v2 }
 0x439   : > { %v2377_v7 = vpop.f32.mrf.mxu0 }
 0x43a   : > { %1467 = vrot.lane.b32.xlu0 %v1465_v4, %s2808_s24 }
 0x43b   : > { %v1462_v9 = vpop.f32.mrf.mxu0 }
 0x43d   : > { %v2378_v11 = vpop.f32.mrf.mxu0 }
 0x43e   : > { %1240 = vrot.lane.b32.xlu0 %v1238_v10, %s2810_s25 }
 0x43f   : > { %v1574_v14 = vpop.f32.mrf.mxu0 }
 0x440   : > { %v1580_v16 = vmul.f32 %v2600_v13, %v1574_v14 }
 0x441   : > { %v2389_v17 = vpop.f32.mrf.mxu0 }
 0x442   : > { %1582 = vrot.lane.b32.xlu1 %v1580_v16, %s2809_s23 }
 0x443   : > { %v1577_v18 = vpop.f32.mrf.mxu0 }
 0x445   : > { %v2390_v19 = vpop.f32.mrf.mxu0 }
 0x447   : > { %v1689_v21 = vpop.f32.mrf.mxu0 }
 0x448   : > { %v1695_v22 = vmul.f32 %v2602_v20, %v1689_v21 }
 0x449   : > { %v2401_v23 = vpop.f32.mrf.mxu0 }
 0x44a   : > { %1697 = vrot.lane.b32.xlu1 %v1695_v22, %s2810_s25 }
 0x44b   : > { %v1692_v25 = vpop.f32.mrf.mxu0 }
 0x44d   : > { %v2402_v26 = vpop.f32.mrf.mxu0 }
 0x467   : > { %v1009_v27 = vpop.permute.xlu1 %1008 }
 0x468   : > { %1012 = vst.msk [vmem:[#allocation3] sm:$0xff] %vm1011_vm4, %v1009_v27 }
 0x494   : > { %v1125_v28 = vpop.permute.xlu1 %1124 }
 0x495   : > { %1128 = vst.msk [vmem:[#allocation3] sm:$0xff] %vm1127_vm5, %v1125_v28 }
 0x4ac   : > { %v1468_v29 = vpop.permute.xlu0 %1467 }
 0x4ad   : > { %1470 = vst.msk [vmem:[#allocation3 + $0x8] sm:$0xff] %vm1011_vm4, %v1468_v29 }
 0x4b0   : > { %v1241_v30 = vpop.permute.xlu0 %1240 }
 0x4b1   : > { %1244 = vst.msk [vmem:[#allocation3] sm:$0xff] %vm1243_vm6, %v1241_v30 }
 0x4b4   : > { %v1583_v31 = vpop.permute.xlu1 %1582 }
 0x4b5   : > { %1585 = vst.msk [vmem:[#allocation3 + $0x8] sm:$0xff] %vm1127_vm5, %v1583_v31 }
 0x4b8   : > { %v1701_v33 = vld [vmem:[#allocation3] sm:$0xff] }
 0x4bc   : > { %v1698_v32 = vpop.permute.xlu1 %1697 }
 0x4bd   : > { %1700 = vst.msk [vmem:[#allocation3 + $0x8] sm:$0xff] %vm1243_vm6, %v1698_v32 }
 0x4c4   : > { %v1702_v34 = vld [vmem:[#allocation3 + $0x8] sm:$0xff] }
 0x4c5   : > { %v1703_v35 = vpack.c.bf16 %v1702_v34, %v1701_v33 }
 0x4c7   : > { %2408 = vmatmul.mubr.msk.bf16.vlgmr.msra.gmra.mxu1 %vm739_vm1, %v1703_v35 }
 0x4c8   : > { %2427 = vmatprep.mubr.msk.bf16.mxu1 %vm2796_vm0, %v2795_v3  ;;  %2420 = vmatpush3.bf16.msra.mxu1 %v2563_v38 }
 0x4c9   : > { %2421 = vmatprep.subr.bf16.mxu1 %v2795_v3 }
 0x4cc   : > { %2422 = vmatpush3.bf16.msra.mxu1 %v2564_v55 }
 0x4cd   : > { %2423 = vmatprep.subr.bf16.mxu1 %v2795_v3 }
 0x587   : > { %v1764_v39 = vpop.f32.mrf.mxu1 }
 0x588   : > { %v1765_v40 = vadd.f32 %v2226_v24, %v1764_v39 }
 0x589   : > { %v2409_v42 = vpop.f32.mrf.mxu1 }
 0x58a   : > { %v1771_v43 = vadd.f32 %v1765_v40, %v3105_v5 }
 0x58b   : > { %v1767_v44 = vpop.f32.mrf.mxu1 }
 0x58c   : > { %v1781_v45 = vmul.f32 %v2230_v41, %v1771_v43  ;;  %v1768_v46 = vadd.f32 %v2226_v24, %v1767_v44 }
 0x58d   : > { %v2410_v47 = vpop.f32.mrf.mxu1 }
 0x58e   : > { %v1772_v48 = vadd.f32 %v1768_v46, %v3107_v6  ;;  %2603 = vtanh.f32 %v1781_v45  ;;  %v2565_v6 = vld [vmem:[%s3088_s13 + $0x8] sm:$0xff]  }
 0x58f   : > { %2424 = vmatpush3.bf16.msra.mxu1 %v2565_v6 }
 0x590   : > { %v1782_v49 = vmul.f32 %v2230_v41, %v1772_v48  ;;  %2425 = vmatprep.subr.bf16.mxu1 %v2795_v3  ;;  %v2236_v3 = vld [vmem:[%s636_s5] ss:$0 sm:$0xff] }
 0x592   : > { %2605 = vtanh.f32 %v1782_v49 }
 0x593   : > { %2426 = vmatpush3.bf16.msra.mxu1 %v2566_v56 }
 0x59b   : > { %v2604_v50 = vpop.eup %2603 }
 0x59c   : > { %v1791_v52 = vmul.f32 %v2604_v50, %v2231_v51 }
 0x59f   : > { %v2606_v5 = vpop.eup %2605 }
 0x5a0   : > { %v1792_v53 = vmul.f32 %v2606_v5, %v2231_v51 }
 0x5a2   : > { %v1793_v54 = vpack.c.bf16 %v1792_v53, %v1791_v52 }
 0x5a4   : > { %2416 = vmatmul.mubr.msk.bf16.vlgmr.msra.gmra.mxu0 %vm739_vm1, %v1793_v54 }
 0x664   : > { %v1854_v58 = vpop.f32.mrf.mxu0 }
 0x665   : > { %v1855_v60 = vadd.f32 %v2232_v57, %v1854_v58 }
 0x666   : > { %v2417_v59 = vpop.f32.mrf.mxu0 }
 0x667   : > { %v1861_v0 = vmax.f32 %v1855_v60, 0.0 }
 0x668   : > { %v1857_v61 = vpop.f32.mrf.mxu0 }
 0x669   : > { %v1858_v62 = vadd.f32 %v2232_v57, %v1857_v61 }
 0x66a   : > { %v2418_v63 = vpop.f32.mrf.mxu0 }
 0x66b   : > { %v1862_v1 = vmax.f32 %v1858_v62, 0.0 }
 0x66d   : > { %v1863_v2 = vpack.c.bf16 %v1862_v1, %v1861_v0 }
 0x66f   : > { %2428 = vmatmul.mubr.msk.bf16.vlgmr.msra.gmra.mxu1 %vm1903_vm7, %v1863_v2 }
 0x72f   : > { %v1941_v4 = vpop.f32.mrf.mxu1 }
 0x730   : > { %v1942_v7 = vadd.f32 %v2236_v3, %v1941_v4 }
 0x731   : > { %v2429_v8 = vpop.f32.mrf.mxu1 }
 0x732   : > { %v1948_v9 = vadd.f32 %v1942_v7, %v1771_v43 }
 0x733   : > { %v1944_v10 = vpop.f32.mrf.mxu1 }
 0x734   : > { %1950 = vst.msk [vmem:[#allocation2] sm:$0xff] %vm739_vm1, %v1948_v9  ;;  %v1945_v11 = vadd.f32 %v2236_v3, %v1944_v10  ;;  %1955 = sbr.rel (%p2242_p7) target bundleno = 1850 (0x73a), region = 119 }
 0x735   : > { %v2430_v12 = vpop.f32.mrf.mxu1 }
 0x736   : > { %v1949_v13 = vadd.f32 %v1945_v11, %v1772_v48 }
 0x738   : > { %1951 = vst.msk [vmem:[#allocation2 + $0x8] sm:$0xff] %vm739_vm1, %v1949_v13 }
 0x739   : > { %1956 = vst.msk [vmem:[%s3094_s29] sm:$0xff] %vm739_vm1, %v1948_v9  ;;  %1957 = vst.msk [vmem:[%s3094_s29 + $0x8] sm:$0xff] %vm739_vm1, %v1949_v13 }
 0x73a PF: > { %s3487_s5 = sld [smem:[#allocation21_spill]]  ;;  %s1972_s30 = sshll.u32 %s3094_s29, 4  ;;  %s3351_s30 = int_to_ptr.vmem [resolvable:$true] %s1972_s30 }
 0x73b   : > { %s3488_s17 = sld [smem:[#allocation17_spill]]  ;;  %s2663_s28 = scalar_lea.vmem %s3351_s30, 256 }
 0x73c   : > { %s3490_s23 = sld [smem:[#allocation37_spill]]  ;;  %p2664_p1 = scmp.ne.s32.totalorder %s3351_s30, %s2663_s28 }
 0x73d   : > { %s2811_s9 = smov [#allocation9]  }
 0x73e   : > { %p2665_p9 = pnand %p2664_p1, %p2971_p12  ;;  %s2667_s0 = sshll.u32 %s2811_s9, 4  ;;  %s2668_s0 = int_to_ptr.vmem [resolvable:$false] %s2667_s0 }
 0x73f   : > { %s2669_s15 = scalar_lea.vmem %s2668_s0, 512  ;;  %p2670_p11 = scmp.lt.s32.totalorder %s3351_s30, %s2668_s0 }
 0x740   : > { %s2252_s16 = sshll.u32 %s3487_s5, 8  ;;  %p2666_p10 = pneg %p2665_p9 }
 0x741   : > { %s3491_s14 = sand.u32 1, %s3488_s17   ;;  %p2671_p3 = scmp.lt.s32.totalorder %s2669_s15, %s2663_s28 }
 0x742   : > { %s3348_s25 = scalar_lea.hbm %s3490_s23, %s2252_s16  ;;  %s3355_s20 = scalar_lea.sflag [#allocation6], %s3491_s14 }
 0x743   : > { %p2672_p5 = por %p2671_p3, %p2670_p11 }
 0x745   : > { %p2673_p6 = pnand %p2672_p5, %p2666_p10 }
 0x747   : > { %2676 = shalt.err (!%p2673_p6)
}
 0x748   : > { %s2677_s29 = scalar_lea.hbm %s3348_s25, 256  ;;  %s2681_s21 = scalar_lea.hbm %s3490_s23, 512 }
 0x749   : > { %p2678_p13 = scmp.ne.s32.totalorder %s3348_s25, %s2677_s29  ;;  %p2682_p8 = scmp.lt.s32.totalorder %s3348_s25, %s3490_s23 }
 0x74a   : > { %p2683_p7 = scmp.lt.s32.totalorder %s2681_s21, %s2677_s29 }
 0x74b   : > { %p2679_p0 = pnand %p2678_p13, %p2971_p12 }
 0x74c   : > { %p2684_p1 = por %p2683_p7, %p2682_p8 }
 0x74d   : > { %p2680_p4 = pneg %p2679_p0 }
 0x74f   : > { %p2685_p9 = pnand %p2684_p1, %p2680_p4 }
 0x751   : > { %2688 = shalt.err (!%p2685_p9)
}
 0x752   : > { %s2812_s3 = smov 128  }
 0x753   : > { %2435 = dma.vmem_to_hbm [thread:$0]  (%p2971_p12), %s3351_s30, 256, %s3348_s25, %s3355_s20, %s2812_s3, %s2812_s3, %s2808_s24  }
 0x754 PF: > { %s3492_s13 = sld [smem:[#allocation24_spill]] }
 0x755   : > { %s3493_s5 = sld [smem:[#allocation16_spill]] }
 0x75a   : > { %p2449_p10 = scmp.ge.s32.totalorder %s3492_s13, 2 }
 0x75b   : > { %s1987_s16 = sand.u32 1, %s3493_s5  }
 0x75c   : > { %p2445_p11 = pnand %p2449_p10, %p2981_p2  ;;  %s1988_s22 = scalar_lea.sflag [#allocation6], %s1987_s16 }
 0x75e   : > { %p2446_p3 = pneg %p2445_p11 }
 0x760   : > { %2744 = dma.done.wait (%p2446_p3), %s1988_s22, 256  }
 0x761   : > { %2746 = vsyncadd (%p2446_p3), %s1988_s22, 4294967040  ;;  %s32_s18 = sadd.s32 1, %s3492_s13   ;;  %s3495_s25 = sld [smem:[#allocation17_spill]] }
 0x762   : > { %p29_p5 = scmp.ge.s32.totalorder %s32_s18, 6   ;;  %s3496_s26 = sld [smem:[#allocation18_spill]] }
 0x763   : > { %s3497_s27 = sld [smem:[#allocation28_spill]] }
 0x764   : > { %s3498_s28 = sld [smem:[#allocation19_spill]] }
 0x765   : > { %s3499_s29 = sld [smem:[#allocation20_spill]] }
 0x766   : > { %s3500_s30 = sld [smem:[#allocation27_spill]]  ;;  %31 = sbr.rel (!%p29_p5) target bundleno = 19 (0x13), region = 208 }
 0x767   : > { %s3501_s14 = sld [smem:[#allocation22_spill]] }
 0x768   : > { %s3502_s15 = sld [smem:[#allocation23_spill]] }
 0x769   : > { %s3503_s16 = sld [smem:[#allocation25_spill]] }
 0x76a   : > { %s3504_s17 = sld [smem:[#allocation26_spill]] }
 0x76b   :  { %1993 = vsyncpa [#allocation5], 1 }
 0x76c   :  { %1995 = vsyncpa [#allocation5 + $0x1], 1 }
 0x76d   :  { %1996 = vsyncpa [#allocation8], 1 }
 0x76e   :  { %1998 = vsyncpa [#allocation8 + $0x1], 1 }
 0x76f   :  { %1999 = vsyncpa [#allocation6], 1 }
 0x770   :  { %2001 = vsyncpa [#allocation6 + $0x1], 1 }

</bundles_post_ra>
